<compile_context>
chip_gen: v6e
topology: v6e:2x2x1
jax: 0.10.0
libtpu: 0.0.40
codegen_flags: <defaults>
</compile_context>

<pallas_src>
import functools

import jax
import jax.numpy as jnp
from jax import lax
from jax.experimental import pallas as pl
from jax.experimental.pallas import tpu as pltpu


def _bugat_kernel(x_ref, w_ref, a_ref, b_ref, adj_ref, pool_ref, out_ref,
                  h_io, h_lin, e_src, *, tile, compute_dtype, adj_resident):
    """grid = (layer, dst_tile).  Scratch persists across grid steps:
       h_io  : layer-0 output (= layer-1 input), f32
       h_lin : W-transformed features of ALL nodes, stored in compute_dtype
       e_src : <h_j, a_src> for all source nodes, lane-major (1, N), f32
    """
    layer = pl.program_id(0)
    t = pl.program_id(1)
    cd = compute_dtype

    # ---------------- per-layer prologue (first dst tile of each layer) ----
    def layer_prologue(src_f32):
        hl = jnp.dot(src_f32.astype(cd), w_ref[...],
                     preferred_element_type=jnp.float32)            # (N, F) on MXU
        h_lin[...] = hl.astype(h_lin.dtype)                         # cached in cd
        # e_src row computed once per layer from the fresh f32 hl, lane-major.
        e_src[...] = lax.dot_general(a_ref[0:1, :], hl,
                                     (((1,), (1,)), ((), ())),
                                     preferred_element_type=jnp.float32)

    @pl.when(jnp.logical_and(t == 0, layer == 0))
    def _():
        layer_prologue(x_ref[...])          # no x -> h_io copy anymore

    @pl.when(jnp.logical_and(t == 0, layer == 1))
    def _():
        layer_prologue(h_io[...])
        out_ref[...] = jnp.zeros_like(out_ref)                      # pooling acc

    # ---------------- attention for this dst tile ---------------------------
    row0 = pl.multiple_of(t * tile, tile)
    hl_tile = h_lin[pl.ds(row0, tile), :]                           # (T, F)
    e_dst = jnp.sum(hl_tile * a_ref[1:2, :], axis=-1, keepdims=True)  # (T, 1) VPU/XLU

    if adj_resident:
        adj_tile = adj_ref[pl.ds(row0, tile), :]                    # int8 (T, N)
    else:
        adj_tile = adj_ref[...]                                     # int8 (T, N)
    adj_f = adj_tile.astype(jnp.float32)                            # cheap unpack

    logits = e_dst + e_src[...]                                     # (T, N) [dst, src]
    lrelu = jnp.where(logits > 0, logits, 0.2 * logits)             # LeakyReLU(0.2)
    masked = jnp.where(adj_f > 0.0, lrelu, -1e30)
    m = jnp.max(masked, axis=-1, keepdims=True)
    p = jnp.exp(masked - m)
    denom = jnp.sum(p, axis=-1, keepdims=True)
    alpha = p * pl.reciprocal(denom, approx=True)                   # softmax over src

    h_out = jnp.dot(alpha.astype(cd), h_lin[...],
                    preferred_element_type=jnp.float32) + b_ref[...]
    h_out = jnp.maximum(h_out, 0.0)         # fused ReLU; eval-mode dropout = identity

    # ---------------- epilogue ----------------------------------------------
    @pl.when(layer == 0)
    def _():
        h_io[pl.ds(row0, tile), :] = h_out                          # layer-1 input

    @pl.when(layer == 1)
    def _():
        # scatter_mean folded in: out += pool[:, tile_rows] @ h2_tile
        pool_tile = pool_ref[:, pl.ds(row0, tile)]                  # (G, T)
        out_ref[...] += jnp.dot(pool_tile, h_out,
                                preferred_element_type=jnp.float32)


def _round_up(v, m):
    return (v + m - 1) // m * m


def _pad2(a, rows, cols):
    return jnp.pad(a, ((0, rows - a.shape[0]), (0, cols - a.shape[1])))


def _vmem_capacity_bytes():
    try:
        return int(pltpu.get_tpu_info().vmem_capacity_bytes)
    except Exception:
        return 64 * 1024 * 1024          # conservative (v7x-sized) fallback


def _pick_tile(n):
    """128-row dst tiles on v5e (4x128 MXU), 256 on v6e/v7x (2x256 MXU)."""
    try:
        kind = jax.devices()[0].device_kind.lower()
    except Exception:
        kind = ""
    old_gen = any(s in kind for s in ("v2", "v3", "v4", "v5"))
    pref = 128 if old_gen else 256
    return max(128, min(pref, _round_up(max(n, 1), 128)))


def bugat_forward(params, x, adj, pool, *, tile=None, compute_dtype=jnp.float32):
    """adj[i, j] = 1 iff edge j -> i (incl. self loops); pool is [G, N] with rows
    already divided by graph size (scatter_mean).  Padding of adj / pool must
    stay exactly zero (see header comment)."""
    n, f_in = x.shape
    f_hid = params["W1"].shape[1]
    f_out = params["W2"].shape[1]
    g = pool.shape[0]

    if tile is None:
        tile = _pick_tile(n)
    assert tile % 128 == 0

    f_pad = _round_up(max(f_in, f_hid, f_out), 128)   # lane-dense feature axis
    n_pad = _round_up(n, tile)
    g_pad = _round_up(g, 8)
    n_tiles = n_pad // tile

    cd = jnp.dtype(compute_dtype)
    cds = cd.itemsize
    f32 = 4

    x_p = _pad2(x, n_pad, f_pad)
    adj_p = _pad2(adj, n_pad, n_pad).astype(jnp.int8)          # int8 mask
    pool_p = _pad2(pool, g_pad, n_pad)
    w_stack = jnp.stack([_pad2(params["W1"], f_pad, f_pad),
                         _pad2(params["W2"], f_pad, f_pad)]).astype(compute_dtype)
    a_stack = jnp.stack([
        jnp.concatenate([_pad2(params["asrc1"], 1, f_pad),
                         _pad2(params["adst1"], 1, f_pad)], axis=0),
        jnp.concatenate([_pad2(params["asrc2"], 1, f_pad),
                         _pad2(params["adst2"], 1, f_pad)], axis=0)])    # (2, 2, F) f32
    b_stack = jnp.stack([_pad2(params["bias1"], 1, f_pad),
                         _pad2(params["bias2"], 1, f_pad)])              # (2, 1, F) f32

    # ---- VMEM budgeting: resident-adj decision + vmem_limit_bytes ----------
    vmem_cap = _vmem_capacity_bytes()
    est_base = (
        2 * n_pad * f_pad * f32            # x (constant index, double-buffered)
        + 2 * f_pad * f_pad * cds          # W (per-layer)
        + 2 * 3 * f_pad * f32              # a + bias
        + 2 * g_pad * n_pad * f32          # pool (resident)
        + 2 * g_pad * f_pad * f32          # out accumulator
        + n_pad * f_pad * (f32 + cds)      # h_io + h_lin scratch
        + 8 * n_pad * f32                  # e_src
        + 6 * tile * n_pad * f32           # softmax temporaries per dst tile
    )
    adj_res_bytes = 2 * n_pad * n_pad      # int8, (conservatively) double-buffered
    adj_resident = (est_base + adj_res_bytes) <= int(0.55 * vmem_cap)
    adj_bytes = adj_res_bytes if adj_resident else 2 * tile * n_pad
    est = est_base + adj_bytes
    vmem_limit = int(min(max(int(1.25 * est), 32 * 1024 * 1024),
                         int(0.85 * vmem_cap)))

    if adj_resident:
        adj_spec = pl.BlockSpec((n_pad, n_pad), lambda l, t: (0, 0))      # one DMA total
    else:
        # TODO(synk): sweep pipeline_mode=pl.Buffered(3) here on v5e if the
        # streamed-adj DMA is still exposed in xprof.
        adj_spec = pl.BlockSpec((tile, n_pad), lambda l, t: (t, 0))       # per dst tile

    kernel = functools.partial(_bugat_kernel, tile=tile,
                               compute_dtype=compute_dtype,
                               adj_resident=adj_resident)

    out_p = pl.pallas_call(
        kernel,
        out_shape=jax.ShapeDtypeStruct((g_pad, f_pad), jnp.float32),
        grid=(2, n_tiles),                                   # (layer, dst tile)
        in_specs=[
            pl.BlockSpec((n_pad, f_pad), lambda l, t: (0, 0)),           # x (resident)
            pl.BlockSpec((None, f_pad, f_pad), lambda l, t: (l, 0, 0)),  # W per layer
            pl.BlockSpec((None, 2, f_pad), lambda l, t: (l, 0, 0)),      # [a_src; a_dst]
            pl.BlockSpec((None, 1, f_pad), lambda l, t: (l, 0, 0)),      # bias
            adj_spec,                                                    # int8 adjacency
            pl.BlockSpec((g_pad, n_pad), lambda l, t: (0, 0)),           # pool (resident)
        ],
        out_specs=pl.BlockSpec((g_pad, f_pad), lambda l, t: (0, 0)),     # resident acc
        scratch_shapes=[
            pltpu.VMEM((n_pad, f_pad), jnp.float32),     # h_io (layer-1 input)
            pltpu.VMEM((n_pad, f_pad), compute_dtype),   # h_lin (compute dtype)
            pltpu.VMEM((1, n_pad), jnp.float32),         # e_src row
        ],
        compiler_params=pltpu.CompilerParams(
            # layer axis is inherently sequential; dst-tile axis carries
            # h_io/h_lin/out_ref state so it must stay "arbitrary" too.
            dimension_semantics=("arbitrary", "arbitrary"),
            vmem_limit_bytes=vmem_limit,
        ),
    )(x_p, w_stack, a_stack, b_stack, adj_p, pool_p)

    return out_p[:g, :f_out]


# ---------------------------------------------------------------------------
# pure-JAX reference (same math) for a correctness check
# ---------------------------------------------------------------------------
def _gat_layer_ref(x, w, a_src, a_dst, bias, adj):
    h = x @ w
    e_dst = (h * a_dst).sum(-1, keepdims=True)
    e_src = (h * a_src).sum(-1, keepdims=True).T
    logits = e_dst + e_src
    logits = jnp.where(logits > 0, logits, 0.2 * logits)
    masked = jnp.where(adj > 0, logits, -1e30)
    alpha = jax.nn.softmax(masked, axis=-1)
    return jnp.maximum(alpha @ h + bias, 0.0)


def bugat_ref(params, x, adj, pool):
    h = _gat_layer_ref(x, params["W1"], params["asrc1"], params["adst1"],
                       params["bias1"], adj)
    h = _gat_layer_ref(h, params["W2"], params["asrc2"], params["adst2"],
                       params["bias2"], adj)
    return pool @ h


def _glorot(key, shape):
    fan_in, fan_out = shape[-2], shape[-1]
    lim = (6.0 / (fan_in + fan_out)) ** 0.5
    return jax.random.uniform(key, shape, jnp.float32, -lim, lim)


if __name__ == "__main__":
    in_feats, hid_feats, out_feats = 16, 32, 8
    dropout_p = 0.5  # eval mode -> identity
    num_nodes, num_graphs = 16, 2

    key = jax.random.PRNGKey(0)
    keys = jax.random.split(key, 9)

    params = {
        "W1":    _glorot(keys[0], (in_feats, hid_feats)),
        "asrc1": _glorot(keys[1], (1, hid_feats)),
        "adst1": _glorot(keys[2], (1, hid_feats)),
        "bias1": jnp.zeros((1, hid_feats), jnp.float32),
        "W2":    _glorot(keys[3], (hid_feats, out_feats)),
        "asrc2": _glorot(keys[4], (1, out_feats)),
        "adst2": _glorot(keys[5], (1, out_feats)),
        "bias2": jnp.zeros((1, out_feats), jnp.float32),
    }

    # node features data.x : [N, in_feats]
    x = jax.random.normal(keys[6], (num_nodes, in_feats), jnp.float32)

    # data.BU_edge_index: bottom-up edges of two 8-node trees (child -> parent)
    src, dst = [], []
    for gi in range(num_graphs):
        base = gi * 8
        for i in range(1, 8):
            src.append(base + i)
            dst.append(base + (i - 1) // 2)
    edge_index = jnp.array([src, dst], dtype=jnp.int32)   # [2, E]

    # dense adjacency mask adj[dst, src] = 1, plus self loops (GATConv default)
    adj = jnp.zeros((num_nodes, num_nodes), jnp.float32)
    adj = adj.at[edge_index[1], edge_index[0]].set(1.0)
    adj = adj.at[jnp.arange(num_nodes), jnp.arange(num_nodes)].set(1.0)

    # data.batch and the scatter_mean pooling matrix (rows divided by counts)
    batch = jnp.array([0] * 8 + [1] * 8, dtype=jnp.int32)
    onehot = (batch[None, :] == jnp.arange(num_graphs)[:, None]).astype(jnp.float32)
    counts = onehot.sum(axis=1, keepdims=True)
    pool = onehot / counts                                  # [G, N]

    # use compute_dtype=jnp.bfloat16 on v6e/v7x for the big MXU operands;
    # f32 here to validate tightly against the f32 reference.
    out = bugat_forward(params, x, adj, pool, compute_dtype=jnp.float32)
    out = jax.block_until_ready(out)

    ref = bugat_ref(params, x, adj, pool)
    assert out.shape == (num_graphs, out_feats)
    # approx reciprocal in the softmax denom -> allow a slightly looser tol
    assert jnp.allclose(out, ref, atol=1e-2, rtol=1e-2), (
        f"max abs err {jnp.max(jnp.abs(out - ref))}")

    print("KERNEL_OK")
</pallas_src>

<mosaic_0001>
module attributes {stable_mosaic.version = 11 : i64} {
  func.func @_bugat_kernel(%arg0: i32, %arg1: i32, %arg2: memref<128x128xf32, #tpu.memory_space<vmem>>, %arg3: memref<1x128x128xf32, #tpu.memory_space<vmem>>, %arg4: memref<1x2x128xf32, #tpu.memory_space<vmem>>, %arg5: memref<1x1x128xf32, #tpu.memory_space<vmem>>, %arg6: memref<128x128xi8, #tpu.memory_space<vmem>>, %arg7: memref<8x128xf32, #tpu.memory_space<vmem>>, %arg8: memref<8x128xf32, #tpu.memory_space<vmem>>, %arg9: memref<128x128xf32, #tpu.memory_space<vmem>>, %arg10: memref<128x128xf32, #tpu.memory_space<vmem>>, %arg11: memref<1x128xf32, #tpu.memory_space<vmem>>) attributes {dimension_semantics = [#tpu.dimension_semantics<arbitrary>, #tpu.dimension_semantics<arbitrary>], iteration_bounds = array<i64: 2, 1>, scalar_prefetch = 0 : i64, scratch_operands = 3 : i64, tpu.core_type = #tpu.core_type<tc>, window_params = [{pipeline_mode = #tpu.pipeline_mode<synchronous>, transform_indices = @transform_0, window_bounds = array<i64: 128, 128>}, {transform_indices = @transform_1, window_bounds = array<i64: 1, 128, 128>}, {transform_indices = @transform_2, window_bounds = array<i64: 1, 2, 128>}, {transform_indices = @transform_3, window_bounds = array<i64: 1, 1, 128>}, {pipeline_mode = #tpu.pipeline_mode<synchronous>, transform_indices = @transform_4, window_bounds = array<i64: 128, 128>}, {pipeline_mode = #tpu.pipeline_mode<synchronous>, transform_indices = @transform_5, window_bounds = array<i64: 8, 128>}, {pipeline_mode = #tpu.pipeline_mode<synchronous>, transform_indices = @transform_6, window_bounds = array<i64: 8, 128>}]} {
    %c0_i32 = arith.constant 0 : i32
    %0 = arith.cmpi eq, %arg1, %c0_i32 : i32
    %c0_i32_0 = arith.constant 0 : i32
    %1 = arith.cmpi eq, %arg0, %c0_i32_0 : i32
    %2 = arith.andi %0, %1 : i1
    %3 = arith.extui %2 : i1 to i32
    %c0_i32_1 = arith.constant 0 : i32
    %4 = arith.cmpi ne, %3, %c0_i32_1 : i32
    scf.if %4 {
      %c0_26 = arith.constant 0 : index
      %c0_27 = arith.constant 0 : index
      %60 = vector.load %arg2[%c0_26, %c0_27] : memref<128x128xf32, #tpu.memory_space<vmem>>, vector<128x128xf32>
      %c0_28 = arith.constant 0 : index
      %c0_29 = arith.constant 0 : index
      %c0_30 = arith.constant 0 : index
      %61 = vector.load %arg3[%c0_28, %c0_29, %c0_30] : memref<1x128x128xf32, #tpu.memory_space<vmem>>, vector<1x128x128xf32>
      %62 = vector.shape_cast %61 : vector<1x128x128xf32> to vector<128x128xf32>
      %cst_31 = arith.constant dense<0.000000e+00> : vector<128x128xf32>
      %63 = tpu.matmul %60, %62, %cst_31 {dimension_numbers = #tpu.dot_dimension_numbers<[1], [0], [0], [1], [0, 0, 1, 1], [], []>} : vector<128x128xf32>, vector<128x128xf32>, vector<128x128xf32> -> vector<128x128xf32>
      %c0_32 = arith.constant 0 : index
      %c0_33 = arith.constant 0 : index
      %64 = vector.load %arg10[%c0_32, %c0_33] : memref<128x128xf32, #tpu.memory_space<vmem>>, vector<128x128xf32>
      tpu.vector_store %arg10[%c0_32, %c0_33], %63 {strides = array<i32>} : memref<128x128xf32, #tpu.memory_space<vmem>>, vector<128x128xf32>,
      %c0_34 = arith.constant 0 : index
      %c0_35 = arith.constant 0 : index
      %c0_36 = arith.constant 0 : index
      %65 = vector.load %arg4[%c0_34, %c0_35, %c0_36] : memref<1x2x128xf32, #tpu.memory_space<vmem>>, vector<1x1x128xf32>
      %66 = vector.shape_cast %65 : vector<1x1x128xf32> to vector<1x128xf32>
      %cst_37 = arith.constant dense<0.000000e+00> : vector<1x128xf32>
      %67 = tpu.matmul %66, %63, %cst_37 {dimension_numbers = #tpu.dot_dimension_numbers<[1], [1], [0], [0], [0, 0, 1, 0], [], []>} : vector<1x128xf32>, vector<128x128xf32>, vector<1x128xf32> -> vector<1x128xf32>
      %c0_38 = arith.constant 0 : index
      %c0_39 = arith.constant 0 : index
      %68 = vector.load %arg11[%c0_38, %c0_39] : memref<1x128xf32, #tpu.memory_space<vmem>>, vector<1x128xf32>
      tpu.vector_store %arg11[%c0_38, %c0_39], %67 {strides = array<i32>} : memref<1x128xf32, #tpu.memory_space<vmem>>, vector<1x128xf32>,
    } else {
    }
    %c0_i32_2 = arith.constant 0 : i32
    %5 = arith.cmpi eq, %arg1, %c0_i32_2 : i32
    %c1_i32 = arith.constant 1 : i32
    %6 = arith.cmpi eq, %arg0, %c1_i32 : i32
    %7 = arith.andi %5, %6 : i1
    %8 = arith.extui %7 : i1 to i32
    %c0_i32_3 = arith.constant 0 : i32
    %9 = arith.cmpi ne, %8, %c0_i32_3 : i32
    scf.if %9 {
      %c0_26 = arith.constant 0 : index
      %c0_27 = arith.constant 0 : index
      %60 = vector.load %arg9[%c0_26, %c0_27] : memref<128x128xf32, #tpu.memory_space<vmem>>, vector<128x128xf32>
      %c0_28 = arith.constant 0 : index
      %c0_29 = arith.constant 0 : index
      %c0_30 = arith.constant 0 : index
      %61 = vector.load %arg3[%c0_28, %c0_29, %c0_30] : memref<1x128x128xf32, #tpu.memory_space<vmem>>, vector<1x128x128xf32>
      %62 = vector.shape_cast %61 : vector<1x128x128xf32> to vector<128x128xf32>
      %cst_31 = arith.constant dense<0.000000e+00> : vector<128x128xf32>
      %63 = tpu.matmul %60, %62, %cst_31 {dimension_numbers = #tpu.dot_dimension_numbers<[1], [0], [0], [1], [0, 0, 1, 1], [], []>} : vector<128x128xf32>, vector<128x128xf32>, vector<128x128xf32> -> vector<128x128xf32>
      %c0_32 = arith.constant 0 : index
      %c0_33 = arith.constant 0 : index
      %64 = vector.load %arg10[%c0_32, %c0_33] : memref<128x128xf32, #tpu.memory_space<vmem>>, vector<128x128xf32>
      tpu.vector_store %arg10[%c0_32, %c0_33], %63 {strides = array<i32>} : memref<128x128xf32, #tpu.memory_space<vmem>>, vector<128x128xf32>,
      %c0_34 = arith.constant 0 : index
      %c0_35 = arith.constant 0 : index
      %c0_36 = arith.constant 0 : index
      %65 = vector.load %arg4[%c0_34, %c0_35, %c0_36] : memref<1x2x128xf32, #tpu.memory_space<vmem>>, vector<1x1x128xf32>
      %66 = vector.shape_cast %65 : vector<1x1x128xf32> to vector<1x128xf32>
      %cst_37 = arith.constant dense<0.000000e+00> : vector<1x128xf32>
      %67 = tpu.matmul %66, %63, %cst_37 {dimension_numbers = #tpu.dot_dimension_numbers<[1], [1], [0], [0], [0, 0, 1, 0], [], []>} : vector<1x128xf32>, vector<128x128xf32>, vector<1x128xf32> -> vector<1x128xf32>
      %c0_38 = arith.constant 0 : index
      %c0_39 = arith.constant 0 : index
      %68 = vector.load %arg11[%c0_38, %c0_39] : memref<1x128xf32, #tpu.memory_space<vmem>>, vector<1x128xf32>
      tpu.vector_store %arg11[%c0_38, %c0_39], %67 {strides = array<i32>} : memref<1x128xf32, #tpu.memory_space<vmem>>, vector<1x128xf32>,
      %cst_40 = arith.constant 0.000000e+00 : f32
      %69 = vector.broadcast %cst_40 : f32 to vector<8x128xf32>
      %c0_41 = arith.constant 0 : index
      %c0_42 = arith.constant 0 : index
      %70 = vector.load %arg8[%c0_41, %c0_42] : memref<8x128xf32, #tpu.memory_space<vmem>>, vector<8x128xf32>
      tpu.vector_store %arg8[%c0_41, %c0_42], %69 {strides = array<i32>} : memref<8x128xf32, #tpu.memory_space<vmem>>, vector<8x128xf32>,
    } else {
    }
    %c128_i32 = arith.constant 128 : i32
    %10 = arith.muli %arg1, %c128_i32 : i32
    %11 = tpu.assume_multiple %10, 128 : i32
    %12 = arith.index_cast %11 : i32 to index
    %c0 = arith.constant 0 : index
    %13 = vector.load %arg10[%12, %c0] : memref<128x128xf32, #tpu.memory_space<vmem>>, vector<128x128xf32>
    %c0_4 = arith.constant 0 : index
    %c1 = arith.constant 1 : index
    %c0_5 = arith.constant 0 : index
    %14 = vector.load %arg4[%c0_4, %c1, %c0_5] : memref<1x2x128xf32, #tpu.memory_space<vmem>>, vector<1x1x128xf32>
    %15 = vector.shape_cast %14 : vector<1x1x128xf32> to vector<1x128xf32>
    %16 = vector.broadcast %15 : vector<1x128xf32> to vector<128x128xf32>
    %17 = arith.mulf %13, %16 : vector<128x128xf32>
    %cst = arith.constant dense<0.000000e+00> : vector<128xf32>
    %18 = vector.multi_reduction <add>, %17, %cst [1] : vector<128x128xf32> to vector<128xf32>
    %19 = vector.shape_cast %18 : vector<128xf32> to vector<128x1xf32>
    %20 = arith.index_cast %11 : i32 to index
    %c0_6 = arith.constant 0 : index
    %21 = vector.load %arg6[%20, %c0_6] : memref<128x128xi8, #tpu.memory_space<vmem>>, vector<128x128xi8>
    %22 = arith.sitofp %21 : vector<128x128xi8> to vector<128x128xf32>
    %c0_7 = arith.constant 0 : index
    %c0_8 = arith.constant 0 : index
    %23 = vector.load %arg11[%c0_7, %c0_8] : memref<1x128xf32, #tpu.memory_space<vmem>>, vector<1x128xf32>
    %24 = vector.broadcast %19 : vector<128x1xf32> to vector<128x128xf32>
    %25 = vector.broadcast %23 : vector<1x128xf32> to vector<128x128xf32>
    %26 = arith.addf %24, %25 : vector<128x128xf32>
    %cst_9 = arith.constant 0.000000e+00 : f32
    %27 = vector.broadcast %cst_9 : f32 to vector<128x128xf32>
    %28 = arith.cmpf ogt, %26, %27 : vector<128x128xf32>
    %cst_10 = arith.constant 2.000000e-01 : f32
    %29 = vector.broadcast %cst_10 : f32 to vector<128x128xf32>
    %30 = arith.mulf %29, %26 : vector<128x128xf32>
    %31 = arith.select %28, %26, %30 : vector<128x128xi1>, vector<128x128xf32>
    %cst_11 = arith.constant 0.000000e+00 : f32
    %32 = vector.broadcast %cst_11 : f32 to vector<128x128xf32>
    %33 = arith.cmpf ogt, %22, %32 : vector<128x128xf32>
    %cst_12 = arith.constant -1.000000e+30 : f32
    %34 = vector.broadcast %cst_12 : f32 to vector<128x128xf32>
    %35 = arith.select %33, %31, %34 : vector<128x128xi1>, vector<128x128xf32>
    %cst_13 = arith.constant dense<0xFF800000> : vector<128xf32>
    %36 = vector.multi_reduction <maximumf>, %35, %cst_13 [1] : vector<128x128xf32> to vector<128xf32>
    %37 = vector.shape_cast %36 : vector<128xf32> to vector<128x1xf32>
    %38 = vector.broadcast %37 : vector<128x1xf32> to vector<128x128xf32>
    %39 = arith.subf %35, %38 : vector<128x128xf32>
    %40 = math.exp %39 : vector<128x128xf32>
    %cst_14 = arith.constant dense<0.000000e+00> : vector<128xf32>
    %41 = vector.multi_reduction <add>, %40, %cst_14 [1] : vector<128x128xf32> to vector<128xf32>
    %42 = vector.shape_cast %41 : vector<128xf32> to vector<128x1xf32>
    %43 = tpu.reciprocal %42 {approx = true} : vector<128x1xf32> -> vector<128x1xf32>
    %44 = vector.broadcast %43 : vector<128x1xf32> to vector<128x128xf32>
    %45 = arith.mulf %40, %44 : vector<128x128xf32>
    %c0_15 = arith.constant 0 : index
    %c0_16 = arith.constant 0 : index
    %46 = vector.load %arg10[%c0_15, %c0_16] : memref<128x128xf32, #tpu.memory_space<vmem>>, vector<128x128xf32>
    %cst_17 = arith.constant dense<0.000000e+00> : vector<128x128xf32>
    %47 = tpu.matmul %45, %46, %cst_17 {dimension_numbers = #tpu.dot_dimension_numbers<[1], [0], [0], [1], [0, 0, 1, 1], [], []>} : vector<128x128xf32>, vector<128x128xf32>, vector<128x128xf32> -> vector<128x128xf32>
    %c0_18 = arith.constant 0 : index
    %c0_19 = arith.constant 0 : index
    %c0_20 = arith.constant 0 : index
    %48 = vector.load %arg5[%c0_18, %c0_19, %c0_20] : memref<1x1x128xf32, #tpu.memory_space<vmem>>, vector<1x1x128xf32>
    %49 = vector.shape_cast %48 : vector<1x1x128xf32> to vector<1x128xf32>
    %50 = vector.broadcast %49 : vector<1x128xf32> to vector<128x128xf32>
    %51 = arith.addf %47, %50 : vector<128x128xf32>
    %cst_21 = arith.constant 0.000000e+00 : f32
    %52 = vector.broadcast %cst_21 : f32 to vector<128x128xf32>
    %53 = arith.maximumf %51, %52 : vector<128x128xf32>
    %c0_i32_22 = arith.constant 0 : i32
    %54 = arith.cmpi eq, %arg0, %c0_i32_22 : i32
    %55 = arith.extui %54 : i1 to i32
    %c0_i32_23 = arith.constant 0 : i32
    %56 = arith.cmpi ne, %55, %c0_i32_23 : i32
    scf.if %56 {
      %60 = arith.index_cast %11 : i32 to index
      %c0_26 = arith.constant 0 : index
      %61 = vector.load %arg9[%60, %c0_26] : memref<128x128xf32, #tpu.memory_space<vmem>>, vector<128x128xf32>
      tpu.vector_store %arg9[%60, %c0_26], %53 {strides = array<i32>} : memref<128x128xf32, #tpu.memory_space<vmem>>, vector<128x128xf32>,
    } else {
    }
    %c1_i32_24 = arith.constant 1 : i32
    %57 = arith.cmpi eq, %arg0, %c1_i32_24 : i32
    %58 = arith.extui %57 : i1 to i32
    %c0_i32_25 = arith.constant 0 : i32
    %59 = arith.cmpi ne, %58, %c0_i32_25 : i32
    scf.if %59 {
      %c0_26 = arith.constant 0 : index
      %60 = arith.index_cast %11 : i32 to index
      %61 = vector.load %arg7[%c0_26, %60] : memref<8x128xf32, #tpu.memory_space<vmem>>, vector<8x128xf32>
      %c0_27 = arith.constant 0 : index
      %c0_28 = arith.constant 0 : index
      %62 = vector.load %arg8[%c0_27, %c0_28] : memref<8x128xf32, #tpu.memory_space<vmem>>, vector<8x128xf32>
      %cst_29 = arith.constant dense<0.000000e+00> : vector<8x128xf32>
      %63 = tpu.matmul %61, %53, %cst_29 {dimension_numbers = #tpu.dot_dimension_numbers<[1], [0], [0], [1], [0, 0, 1, 1], [], []>} : vector<8x128xf32>, vector<128x128xf32>, vector<8x128xf32> -> vector<8x128xf32>
      %64 = arith.addf %62, %63 : vector<8x128xf32>
      %c0_30 = arith.constant 0 : index
      %c0_31 = arith.constant 0 : index
      %65 = vector.load %arg8[%c0_30, %c0_31] : memref<8x128xf32, #tpu.memory_space<vmem>>, vector<8x128xf32>
      tpu.vector_store %arg8[%c0_30, %c0_31], %64 {strides = array<i32>} : memref<8x128xf32, #tpu.memory_space<vmem>>, vector<8x128xf32>,
    } else {
    }
    return
  }
  func.func @transform_0(%arg0: i32, %arg1: i32) -> (i32, i32) {
    %c0_i32 = arith.constant 0 : i32
    %c0_i32_0 = arith.constant 0 : i32
    %c0_i32_1 = arith.constant 0 : i32
    return %c0_i32, %c0_i32_0 : i32, i32
  }
  func.func @transform_1(%arg0: i32, %arg1: i32) -> (i32, i32, i32) {
    %c0_i32 = arith.constant 0 : i32
    %c0_i32_0 = arith.constant 0 : i32
    %c0_i32_1 = arith.constant 0 : i32
    return %arg0, %c0_i32, %c0_i32_0 : i32, i32, i32
  }
  func.func @transform_2(%arg0: i32, %arg1: i32) -> (i32, i32, i32) {
    %c0_i32 = arith.constant 0 : i32
    %c0_i32_0 = arith.constant 0 : i32
    %c0_i32_1 = arith.constant 0 : i32
    return %arg0, %c0_i32, %c0_i32_0 : i32, i32, i32
  }
  func.func @transform_3(%arg0: i32, %arg1: i32) -> (i32, i32, i32) {
    %c0_i32 = arith.constant 0 : i32
    %c0_i32_0 = arith.constant 0 : i32
    %c0_i32_1 = arith.constant 0 : i32
    return %arg0, %c0_i32, %c0_i32_0 : i32, i32, i32
  }
  func.func @transform_4(%arg0: i32, %arg1: i32) -> (i32, i32) {
    %c0_i32 = arith.constant 0 : i32
    %c0_i32_0 = arith.constant 0 : i32
    %c0_i32_1 = arith.constant 0 : i32
    return %c0_i32, %c0_i32_0 : i32, i32
  }
  func.func @transform_5(%arg0: i32, %arg1: i32) -> (i32, i32) {
    %c0_i32 = arith.constant 0 : i32
    %c0_i32_0 = arith.constant 0 : i32
    %c0_i32_1 = arith.constant 0 : i32
    return %c0_i32, %c0_i32_0 : i32, i32
  }
  func.func @transform_6(%arg0: i32, %arg1: i32) -> (i32, i32) {
    %c0_i32 = arith.constant 0 : i32
    %c0_i32_0 = arith.constant 0 : i32
    %c0_i32_1 = arith.constant 0 : i32
    return %c0_i32, %c0_i32_0 : i32, i32
  }
}

</mosaic_0001>

<bundles_post_ra>
// kernel: tpu_custom_call.1
= control target key start
LH: loop header
LB: loop body
LE: loop exit
PB: predicated region body
PF: predicated region fallthrough
CT: control target
= control target key end

     0   :  { %s3210_s0 = inlined_call_operand.hbm [shape: f32[128,128], index: 0, kind: input, shape index: {}]   ;;  %s3211_s1 = inlined_call_operand.hbm [shape: f32[2,128,128], index: 1, kind: input, shape index: {}]   ;;  %s3212_s2 = inlined_call_operand.hbm [shape: f32[2,2,128], index: 2, kind: input, shape index: {}]   ;;  %s3213_s3 = inlined_call_operand.hbm [shape: f32[2,1,128], index: 3, kind: input, shape index: {}]   ;;  %s3214_s4 = inlined_call_operand.hbm [shape: s8[128,128], index: 4, kind: input, shape index: {}]   ;;  %s3215_s5 = inlined_call_operand.vmem [shape: f32[8,128], index: 5, kind: input, shape index: {}]   ;;  %s3216_s6 = inlined_call_operand.hbm [shape: f32[8,128], index: 6, kind: output, shape index: {}]  }
   0x1   :  { %3219 = sst [smem:[#allocation20_spill]] %s3211_s1 }
   0x2   :  { %3220 = sst [smem:[#allocation21_spill]] %s3214_s4 }
   0x3   :  { %3221 = sst [smem:[#allocation22_spill]] %s3215_s5 }
   0x4   :  { %3222 = sst [smem:[#allocation23_spill]] %s3216_s6 }
   0x5   :  { %11 = vsyncpa [#allocation6], 0 }
   0x6   :  { %12 = vsyncpa [#allocation9], 0 }
   0x7   :  { %14 = vsyncpa [#allocation9 + $0x1], 0 }
   0x8   :  { %15 = vsyncpa [#allocation12], 0 }
   0x9   :  { %17 = vsyncpa [#allocation12 + $0x1], 0 }
   0xa   :  { %18 = vsyncpa [#allocation7], 0  ;;  %s2609_s21 = smov 0   ;;  %s2611_s22 = smov 0  }
   0xb   :  { %s2613_s23 = smov 0   ;;  %s2615_s24 = smov 0  }
   0xc   :  { %s2617_s25 = smov 0   ;;  %s2619_s26 = smov 0  }
   0xd LB: > { %s2638_s27 = sadd.s32 4294967295, %s2558_s26   ;;  %s64_s28 = sadd.s32 1, %s2546_s23  ;;  %s2558_s26 = sphi %s2619_s26, %s24_s26   ;;  %s2554_s25 = sphi %s2617_s25, %s3242_s25   ;;  %s2550_s24 = sphi %s2615_s24, %s3241_s24   ;;  %s2546_s23 = sphi %s2613_s23, %s3240_s23   ;;  %s2542_s22 = sphi %s2611_s22, %s3239_s22   ;;  %s2538_s21 = sphi %s2609_s21, %s3238_s21  }
   0xe   : > { %p71_p0 = scmp.ne.s32.totalorder %s2546_s23, %s2542_s22  ;;  %p72_p1 = scmp.eq.s32.totalorder %s2558_s26, 0 }
   0xf   : > { %p77_p2 = scmp.ne.s32.totalorder %s2542_s22, %s2538_s21  ;;  %p3217_p3 = scmp.eq.s32.totalorder %s2638_s27, 0 }
  0x10   : > { %p2646_p4 = por %p72_p1, %p71_p0  ;;  %p1686_p5 = scmp.ge.s32.totalorder %s2558_s26, 1 }
  0x11   : > { %p2653_p6 = por %p3217_p3, %p77_p2  ;;  %p203_p7 = scmp.lt.s32.totalorder %s2558_s26, 3 }
  0x12   : > { %s2560_s8 = smov [#allocation13]   ;;  %s36_s11 = sadd.s32 1, %s2554_s25 }
  0x13   : > { %p2658_p8 = pnand %p1686_p5, %p203_p7  ;;  %s228_s9 = sshll.u32 %s2560_s8, 4  ;;  %s229_s9 = int_to_ptr.vmem [resolvable:$true] %s228_s9 }
  0x14   : > { %p2204_p11 = scmp.lt.s32.totalorder %s2558_s26, 2  ;;  %p2672_p12 = scmp.ge.s32.totalorder %s36_s11, 2 }
  0x15   : > { %p2185_p9 = pneg %p2658_p8  ;;  %s2343_s13 = scalar_lea.vmem %s229_s9, 512 }
  0x16   : > { %p2344_p0 = scmp.ne.s32.totalorder %s229_s9, %s2343_s13  ;;  %p2351_p5 = scmp.lt.s32.totalorder %s229_s9, %s229_s9 }
  0x17   : > { %p2666_p10 = pnand %p2185_p9, %p3217_p3  ;;  %p2352_p7 = scmp.lt.s32.totalorder %s2343_s13, %s2343_s13 }
  0x19   : > { %p2334_p13 = pneg %p2666_p10  ;;  %p2353_p9 = por %p2352_p7, %p2351_p5 }
  0x1b   : > { %p2346_p1 = pnand %p2344_p0, %p2334_p13 }
  0x1d   : > { %p2347_p2 = pneg %p2346_p1 }
  0x1f   : > { %p2354_p3 = pnand %p2353_p9, %p2347_p2 }
  0x21   : > { %2357 = shalt.err (!%p2354_p3)
}
  0x22   : > { %s2561_s14 = smov 128   ;;  %s2562_s15 = smov 8  }
  0x23   : > { %s3228_s4 = sld [smem:[#allocation21_spill]]  ;;  %s3244_s11 = smov (%p2672_p12, %s36_s11), 0 }
  0x24   : > { %s3218_s18 = sand.u32 1, %s2558_s26   ;;  %s2695_s19 = sand.u32 1, %s2546_s23  }
  0x25   : > { %s61_s20 = ssub.s32 %s2554_s25, %s3244_s11  ;;  %s1690_s21 = sshll.u32 %s2695_s19, 7 }
  0x26   : > { %p62_p3 = scmp.eq.s32.totalorder %s61_s20, 0  ;;  %s1712_s8 = sshll.u32 %s2554_s25, 11 }
  0x27   : > { %s3229_s1 = sld [smem:[#allocation20_spill]]  ;;  %p2713_p12 = pnand %p2204_p11, %p2646_p4 }
  0x28   : > { %s2704_s13 = scalar_select %p62_p3, %s2546_s23, %s64_s28  }
  0x29   : > { %2191 = dma.hbm_to_vmem [thread:$0]  (!%p2666_p10), %s3228_s4, 512, %s229_s9, [#allocation12], %s2561_s14, %s2561_s14, %s2562_s15  }
  0x2a   : > { %s249_s9 = scalar_lea.vmem [#allocation8], %s1690_s21  ;;  %s2719_s20 = scalar_lea.sflag [#allocation9], %s3218_s18 }
  0x2b   : > { %s256_s12 = sshll.u32 %s249_s9, 4  ;;  %p2360_p0 = pneg %p2713_p12  ;;  %s257_s12 = int_to_ptr.vmem [resolvable:$true] %s256_s12 }
  0x2c   : > { %s2371_s28 = scalar_lea.vmem %s257_s12, 2048  ;;  %s2563_s5 = smov [#allocation8]  }
  0x2d   : > { %s255_s16 = scalar_lea.hbm %s3229_s1, %s1712_s8  ;;  %p2372_p1 = scmp.ne.s32.totalorder %s257_s12, %s2371_s28 }
  0x2e   : > { %s2376_s6 = sshll.u32 %s2563_s5, 4  ;;  %s2377_s6 = int_to_ptr.vmem [resolvable:$false] %s2376_s6 }
  0x2f   : > { %p2374_p2 = pnand %p2372_p1, %p2360_p0  ;;  %s2378_s29 = scalar_lea.vmem %s2377_s6, 4096 }
  0x30   : > { %p2379_p4 = scmp.lt.s32.totalorder %s257_s12, %s2377_s6  ;;  %p2380_p11 = scmp.lt.s32.totalorder %s2378_s29, %s2371_s28 }
  0x31   : > { %p2375_p5 = pneg %p2374_p2 }
  0x32   : > { %p2381_p7 = por %p2380_p11, %p2379_p4 }
  0x34   : > { %p2382_p9 = pnand %p2381_p7, %p2375_p5 }
  0x36   : > { %2385 = shalt.err (!%p2382_p9)
}
  0x37   : > { %2195 = dma.hbm_to_vmem [thread:$0]  (!%p2713_p12), %s255_s16, 2048, %s257_s12, %s2719_s20, %s2561_s14, %s2561_s14, %s2562_s15  }
  0x38   : > { %s2564_s21 = smov [#allocation5]   ;;  %s1693_s9 = sshll.u32 %s2695_s19, 1 }
  0x39   : > { %s215_s8 = sshll.u32 %s2564_s21, 4  ;;  %s216_s8 = int_to_ptr.vmem [resolvable:$true] %s215_s8 }
  0x3a   : > { %s2397_s5 = scalar_lea.vmem %s216_s8, 2048  ;;  %p2405_p5 = scmp.lt.s32.totalorder %s216_s8, %s216_s8 }
  0x3b   : > { %p2398_p3 = scmp.ne.s32.totalorder %s216_s8, %s2397_s5  ;;  %p2406_p4 = scmp.lt.s32.totalorder %s2397_s5, %s2397_s5 }
  0x3d   : > { %p2400_p1 = pnand %p2398_p3, %p2334_p13  ;;  %p2407_p11 = por %p2406_p4, %p2405_p5 }
  0x3f   : > { %p2401_p2 = pneg %p2400_p1 }
  0x41   : > { %p2408_p7 = pnand %p2407_p11, %p2401_p2 }
  0x43   : > { %2411 = shalt.err (!%p2408_p7)
}
  0x44   : > { %2188 = dma.hbm_to_vmem [thread:$0]  (!%p2666_p10), %s3210_s0, 2048, %s216_s8, [#allocation6], %s2561_s14, %s2561_s14, %s2562_s15  }
  0x45   : > { %s1694_s28 = sshll.u32 %s2554_s25, 5  ;;  %s270_s6 = scalar_lea.vmem [#allocation10], %s1693_s9 }
  0x46   : > { %s277_s29 = sshll.u32 %s270_s6, 4  ;;  %s275_s5 = scalar_lea.hbm %s3212_s2, %s1694_s28  ;;  %s278_s29 = int_to_ptr.vmem [resolvable:$true] %s277_s29 }
  0x47   : > { %s2425_s1 = scalar_lea.vmem %s278_s29, 32  ;;  %s2565_s10 = smov [#allocation10]  }
  0x48   : > { %p2426_p13 = scmp.ne.s32.totalorder %s278_s29, %s2425_s1  ;;  %s2430_s4 = sshll.u32 %s2565_s10, 4  ;;  %s2431_s4 = int_to_ptr.vmem [resolvable:$false] %s2430_s4 }
  0x49   : > { %s2432_s16 = scalar_lea.vmem %s2431_s4, 64  ;;  %p2433_p1 = scmp.lt.s32.totalorder %s278_s29, %s2431_s4 }
  0x4a   : > { %p2428_p9 = pnand %p2426_p13, %p2360_p0  ;;  %p2434_p10 = scmp.lt.s32.totalorder %s2432_s16, %s2425_s1 }
  0x4c   : > { %p2429_p3 = pneg %p2428_p9  ;;  %p2435_p2 = por %p2434_p10, %p2433_p1 }
  0x4e   : > { %p2436_p5 = pnand %p2435_p2, %p2429_p3 }
  0x50   : > { %2439 = shalt.err (!%p2436_p5)
}
  0x51   : > { %2198 = dma.hbm_to_vmem [thread:$0]  (!%p2713_p12), %s275_s5, 32, %s278_s29, %s2719_s20  }
  0x52   : > { %s1695_s14 = sshll.u32 %s2554_s25, 4  ;;  %s287_s15 = scalar_lea.vmem [#allocation11], %s2695_s19 }
  0x53   : > { %s294_s18 = sshll.u32 %s287_s15, 4  ;;  %s292_s12 = scalar_lea.hbm %s3213_s3, %s1695_s14  ;;  %s295_s18 = int_to_ptr.vmem [resolvable:$true] %s294_s18 }
  0x54   : > { %s3231_s1 = sand.u32 1, %s2558_s26   ;;  %s2453_s28 = scalar_lea.vmem %s295_s18, 16 }
  0x55   : > { %s285_s4 = scalar_lea.sflag [#allocation12], %s3231_s1  ;;  %p2454_p4 = scmp.ne.s32.totalorder %s295_s18, %s2453_s28 }
  0x56   : > { %s2566_s6 = smov [#allocation11]  }
  0x57   : > { %p2456_p11 = pnand %p2454_p4, %p2360_p0  ;;  %s2458_s21 = sshll.u32 %s2566_s6, 4  ;;  %s2459_s21 = int_to_ptr.vmem [resolvable:$false] %s2458_s21 }
  0x58   : > { %s2460_s20 = scalar_lea.vmem %s2459_s21, 32  ;;  %p2461_p13 = scmp.lt.s32.totalorder %s295_s18, %s2459_s21 }
  0x59   : > { %p2457_p7 = pneg %p2456_p11  ;;  %p2462_p9 = scmp.lt.s32.totalorder %s2460_s20, %s2453_s28 }
  0x5b   : > { %p2463_p3 = por %p2462_p9, %p2461_p13 }
  0x5d   : > { %p2464_p1 = pnand %p2463_p3, %p2457_p7 }
  0x5f   : > { %2467 = shalt.err (!%p2464_p1)
}
  0x60   : > { %2201 = dma.hbm_to_vmem [thread:$0]  (!%p2713_p12), %s292_s12, 16, %s295_s18, %s285_s4  }
  0x61   : > { %303 = sbr.rel (%p2658_p8) target bundleno = 2091 (0x82b), region = 44  ;;  %p3232_p10 = scmp.eq.s32.totalorder (!%p2658_p8), %s2638_s27, 0 }
  0x66   : > { %2517 = dma.done.wait (%p3232_p10), [#allocation6], 2048   ;;  %p3233_p0 = pmov %p3232_p10 }
  0x67   : > { %s309_s19 = sand.u32 1, %s2638_s27   ;;  %s2774_s29 = sand.u32 1, %s2542_s22  }
  0x68   : > { %2519 = vsyncadd (%p3233_p0), [#allocation6], 4294965248  ;;  %s1698_s5 = sshll.u32 %s2774_s29, 7  ;;  %s310_s10 = scalar_lea.sflag [#allocation9], %s309_s19 }
  0x69   : > { %s2777_s17 = scalar_lea.vmem [#allocation8], %s1698_s5 }
  0x6a   : > { %2521 = dma.done.wait (%p2653_p6), %s310_s10, 2080  }
  0x6b   : > { %2523 = vsyncadd (%p2653_p6), %s310_s10, 4294965216  ;;  %s1699_s7 = sshll.u32 %s2774_s29, 1  ;;  %s328_s14 = scalar_lea.sflag [#allocation12], %s309_s19 }
  0x6c   : > { %s2784_s16 = scalar_lea.vmem [#allocation10], %s1699_s7  ;;  %s330_s15 = scalar_lea.vmem [#allocation11], %s2774_s29 }
  0x6d   : > { %2525 = dma.done.wait (%p2653_p6), %s328_s14, 16  }
  0x6e   : > { %2527 = vsyncadd (%p2653_p6), %s328_s14, 4294967280  ;;  %p3234_p8 = pmov %p3233_p0 }
  0x6f   : > { %p3235_p12 = pmov %p3233_p0 }
  0x70   : > { %2529 = dma.done.wait (%p3234_p8), [#allocation12], 512  }
  0x71   : > { %2531 = vsyncadd (%p3235_p12), [#allocation12], 4294966784  ;;  %p368_p2 = scmp.eq.s32.totalorder %s2550_s24, 0 }
  0x72   : > { %v404_v0 = vld [vmem:[%s2777_s17 + $0x78] sm:$0xff] (%p368_p2)  ;;  %v403_v1 = vld [vmem:[%s2777_s17 + $0x70] sm:$0xff] (%p368_p2)  ;;  %v402_v2 = vld [vmem:[%s2777_s17 + $0x68] sm:$0xff] (%p368_p2)  ;;  %v2567_v32 = vmov (%p368_p2), 0.0   ;;  %vm2568_vm0 = vmmov (%p368_p2), 0  }
  0x73   : > { %372 = sbr.rel (!%p368_p2) target bundleno = 626 (0x272), region = 68  ;;  %1862 = vmatprep.subr.mxu0 (%p368_p2), %v404_v0  ;;  %v401_v3 = vld [vmem:[%s2777_s17 + $0x60] sm:$0xff] (%p368_p2)  ;;  %v400_v5 = vld [vmem:[%s2777_s17 + $0x58] sm:$0xff] (%p368_p2)  ;;  %v399_v6 = vld [vmem:[%s2777_s17 + $0x50] sm:$0xff] (%p368_p2)  ;;  %1918 = vmatprep.subr.mxu1 (%p368_p2), %v2567_v32 }
  0x74   : > { %1863 = vmatpush3.msra.mxu0 (%p368_p2), %v404_v0  ;;  %v373_v4 = vld [vmem:[#allocation5] sm:$0xff] (%p368_p2)  ;;  %v398_v7 = vld [vmem:[%s2777_s17 + $0x48] sm:$0xff] (%p368_p2)  ;;  %v396_v9 = vld [vmem:[%s2777_s17 + $0x38] sm:$0xff] (%p368_p2)  ;;  %1950 = vmatprep.mubr.msk.f32.mxu1 (%p368_p2), %vm2568_vm0, %v2567_v32 }
  0x75   : > { %1864 = vmatprep.subr.mxu0 (%p368_p2), %v403_v1  ;;  %1894 = vmatprep.mubr.f32.mxu0 (%p368_p2), %v373_v4  ;;  %v397_v8 = vld [vmem:[%s2777_s17 + $0x40] sm:$0xff] (%p368_p2)  ;;  %v395_v10 = vld [vmem:[%s2777_s17 + $0x30] sm:$0xff] (%p368_p2)  ;;  %v394_v11 = vld [vmem:[%s2777_s17 + $0x28] sm:$0xff] (%p368_p2) }
  0x76   : > { %1865 = vmatpush3.msra.mxu0 (%p368_p2), %v403_v1  ;;  %v393_v12 = vld [vmem:[%s2777_s17 + $0x20] sm:$0xff] (%p368_p2)  ;;  %v392_v13 = vld [vmem:[%s2777_s17 + $0x18] sm:$0xff] (%p368_p2)  ;;  %v391_v14 = vld [vmem:[%s2777_s17 + $0x10] sm:$0xff] (%p368_p2) }
  0x77   : > { %1866 = vmatprep.subr.mxu0 (%p368_p2), %v402_v2  ;;  %v390_v15 = vld [vmem:[%s2777_s17 + $0x8] sm:$0xff] (%p368_p2)  ;;  %v389_v16 = vld [vmem:[%s2777_s17] sm:$0xff] (%p368_p2)  ;;  %v375_v18 = vld [vmem:[#allocation5 + $0x10] sm:$0xff] (%p368_p2) }
  0x78   : > { %1867 = vmatpush3.msra.mxu0 %v402_v2  ;;  %v374_v17 = vld [vmem:[#allocation5 + $0x8] sm:$0xff]  ;;  %v376_v19 = vld [vmem:[#allocation5 + $0x18] sm:$0xff]  ;;  %v377_v20 = vld [vmem:[#allocation5 + $0x20] sm:$0xff] }
  0x79   : > { %1868 = vmatprep.subr.mxu0 %v401_v3  ;;  %v378_v21 = vld [vmem:[#allocation5 + $0x28] sm:$0xff]  ;;  %v379_v22 = vld [vmem:[#allocation5 + $0x30] sm:$0xff]  ;;  %v380_v23 = vld [vmem:[#allocation5 + $0x38] sm:$0xff] }
  0x7a   : > { %1869 = vmatpush3.msra.mxu0 %v401_v3  ;;  %v381_v24 = vld [vmem:[#allocation5 + $0x40] sm:$0xff]  ;;  %v382_v25 = vld [vmem:[#allocation5 + $0x48] sm:$0xff]  ;;  %v383_v26 = vld [vmem:[#allocation5 + $0x50] sm:$0xff] }
  0x7b   : > { %1870 = vmatprep.subr.mxu0 %v400_v5  ;;  %v384_v27 = vld [vmem:[#allocation5 + $0x58] sm:$0xff]  ;;  %v385_v28 = vld [vmem:[#allocation5 + $0x60] sm:$0xff]  ;;  %v386_v29 = vld [vmem:[#allocation5 + $0x68] sm:$0xff] }
  0x7c   : > { %1871 = vmatpush3.msra.mxu0 %v400_v5  ;;  %v387_v30 = vld [vmem:[#allocation5 + $0x70] sm:$0xff]  ;;  %v388_v31 = vld [vmem:[#allocation5 + $0x78] sm:$0xff]  ;;  %v566_v49 = vld [vmem:[%s2784_s16] sm:$0x1] }
  0x7d   : > { %1872 = vmatprep.subr.mxu0 %v399_v6 }
  0x7e   : > { %1873 = vmatpush3.msra.mxu0 %v399_v6 }
  0x7f   : > { %1874 = vmatprep.subr.mxu0 %v398_v7 }
  0x80   : > { %1875 = vmatpush3.msra.mxu0 %v398_v7 }
  0x81   : > { %1876 = vmatprep.subr.mxu0 %v397_v8 }
  0x82   : > { %1877 = vmatpush3.msra.mxu0 %v397_v8 }
  0x83   : > { %1878 = vmatprep.subr.mxu0 %v396_v9 }
  0x84   : > { %1879 = vmatpush3.msra.mxu0 %v396_v9 }
  0x85   : > { %1880 = vmatprep.subr.mxu0 %v395_v10 }
  0x86   : > { %1881 = vmatpush3.msra.mxu0 %v395_v10 }
  0x87   : > { %1882 = vmatprep.subr.mxu0 %v394_v11 }
  0x88   : > { %1883 = vmatpush3.msra.mxu0 %v394_v11 }
  0x89   : > { %1884 = vmatprep.subr.mxu0 %v393_v12 }
  0x8a   : > { %1885 = vmatpush3.msra.mxu0 %v393_v12 }
  0x8b   : > { %1886 = vmatprep.subr.mxu0 %v392_v13 }
  0x8c   : > { %1887 = vmatpush3.msra.mxu0 %v392_v13 }
  0x8d   : > { %1888 = vmatprep.subr.mxu0 %v391_v14 }
  0x8e   : > { %1889 = vmatpush3.msra.mxu0 %v391_v14 }
  0x8f   : > { %1890 = vmatprep.subr.mxu0 %v390_v15 }
  0x90   : > { %1891 = vmatpush3.msra.mxu0 %v390_v15 }
  0x91   : > { %1892 = vmatprep.subr.mxu0 %v389_v16 }
  0x92   : > { %1893 = vmatpush3.msra.mxu0 %v389_v16 }
  0x93   : > { %1895 = vmatmul.mubr.f32.vlgmr.msra.gmra.mxu0 %v374_v17 }
  0x94   : > { %1897 = vmatprep.mubr.f32.mxu0 %v375_v18 }
  0x97   : > { %1898 = vmatmul.mubr.f32.gmra.mxu0 %v376_v19 }
  0x98   : > { %1900 = vmatprep.mubr.f32.mxu0 %v377_v20 }
  0x9b   : > { %1901 = vmatmul.mubr.f32.gmra.mxu0 %v378_v21 }
  0x9c   : > { %1903 = vmatprep.mubr.f32.mxu0 %v379_v22 }
  0x9f   : > { %1904 = vmatmul.mubr.f32.gmra.mxu0 %v380_v23 }
  0xa0   : > { %1906 = vmatprep.mubr.f32.mxu0 %v381_v24 }
  0xa3   : > { %1907 = vmatmul.mubr.f32.gmra.mxu0 %v382_v25 }
  0xa4   : > { %1909 = vmatprep.mubr.f32.mxu0 %v383_v26 }
  0xa7   : > { %1910 = vmatmul.mubr.f32.gmra.mxu0 %v384_v27 }
  0xa8   : > { %1912 = vmatprep.mubr.f32.mxu0 %v385_v28 }
  0xab   : > { %1913 = vmatmul.mubr.f32.gmra.mxu0 %v386_v29 }
  0xac   : > { %1915 = vmatprep.mubr.f32.mxu0 %v387_v30 }
  0xaf   : > { %1916 = vmatmul.mubr.f32.gmra.mxu0 %v388_v31 }
 0x153   : > { %v1896_v33 = vpop.f32.mrf.mxu0 }
 0x154   : > { %551 = vst [vmem:[#allocation3 + $0x68] sm:$0xff] %v1896_v33 }
 0x155   : > { %v471_v34 = vpop.f32.mrf.mxu0 }
 0x156   : > { %550 = vst [vmem:[#allocation3 + $0x28] sm:$0xff] %v471_v34 }
 0x157   : > { %v1899_v35 = vpop.f32.mrf.mxu0 }
 0x158   : > { %553 = vst [vmem:[#allocation3 + $0x40] sm:$0xff] %v1899_v35 }
 0x159   : > { %v481_v36 = vpop.f32.mrf.mxu0 }
 0x15a   : > { %552 = vst [vmem:[#allocation3 + $0x10] sm:$0xff] %v481_v36 }
 0x15b   : > { %v1902_v37 = vpop.f32.mrf.mxu0 }
 0x15c   : > { %555 = vst [vmem:[#allocation3 + $0x30] sm:$0xff] %v1902_v37 }
 0x15d   : > { %v491_v38 = vpop.f32.mrf.mxu0 }
 0x15e   : > { %554 = vst [vmem:[#allocation3 + $0x48] sm:$0xff] %v491_v38 }
 0x15f   : > { %v1905_v39 = vpop.f32.mrf.mxu0 }
 0x160   : > { %557 = vst [vmem:[#allocation3 + $0x38] sm:$0xff] %v1905_v39 }
 0x161   : > { %v501_v40 = vpop.f32.mrf.mxu0 }
 0x162   : > { %556 = vst [vmem:[#allocation3 + $0x70] sm:$0xff] %v501_v40 }
 0x163   : > { %v1908_v41 = vpop.f32.mrf.mxu0 }
 0x164   : > { %559 = vst [vmem:[#allocation3 + $0x78] sm:$0xff] %v1908_v41 }
 0x165   : > { %v511_v42 = vpop.f32.mrf.mxu0 }
 0x166   : > { %558 = vst [vmem:[#allocation3 + $0x20] sm:$0xff] %v511_v42 }
 0x167   : > { %v1911_v43 = vpop.f32.mrf.mxu0 }
 0x168   : > { %561 = vst [vmem:[#allocation3 + $0x58] sm:$0xff] %v1911_v43 }
 0x169   : > { %v521_v44 = vpop.f32.mrf.mxu0 }
 0x16a   : > { %560 = vst [vmem:[#allocation3 + $0x18] sm:$0xff] %v521_v44 }
 0x16b   : > { %v1914_v45 = vpop.f32.mrf.mxu0 }
 0x16c   : > { %563 = vst [vmem:[#allocation3 + $0x8] sm:$0xff] %v1914_v45 }
 0x16d   : > { %v531_v46 = vpop.f32.mrf.mxu0 }
 0x16e   : > { %562 = vst [vmem:[#allocation3] sm:$0xff] %v531_v46 }
 0x16f   : > { %v1917_v47 = vpop.f32.mrf.mxu0 }
 0x170   : > { %565 = vst [vmem:[#allocation3 + $0x50] sm:$0xff] %v1917_v47  ;;  %1919 = vmatpush3.xpose.msra.mxu1 %v1917_v47 }
 0x171   : > { %v541_v48 = vpop.f32.mrf.mxu0  ;;  %1920 = vmatprep.subr.mxu1 %v2567_v32 }
 0x172   : > { %564 = vst [vmem:[#allocation3 + $0x60] sm:$0xff] %v541_v48 }
 0x174   : > { %1921 = vmatpush3.xpose.msra.mxu1 %v541_v48 }
 0x175   : > { %1922 = vmatprep.subr.mxu1 %v2567_v32 }
 0x178   : > { %1923 = vmatpush3.xpose.msra.mxu1 %v1914_v45 }
 0x179   : > { %1924 = vmatprep.subr.mxu1 %v2567_v32 }
 0x17c   : > { %1925 = vmatpush3.xpose.msra.mxu1 %v531_v46 }
 0x17d   : > { %1926 = vmatprep.subr.mxu1 %v2567_v32 }
 0x180   : > { %1927 = vmatpush3.xpose.msra.mxu1 %v1911_v43 }
 0x181   : > { %1928 = vmatprep.subr.mxu1 %v2567_v32 }
 0x184   : > { %1929 = vmatpush3.xpose.msra.mxu1 %v521_v44 }
 0x185   : > { %1930 = vmatprep.subr.mxu1 %v2567_v32 }
 0x188   : > { %1931 = vmatpush3.xpose.msra.mxu1 %v1908_v41 }
 0x189   : > { %1932 = vmatprep.subr.mxu1 %v2567_v32 }
 0x18c   : > { %1933 = vmatpush3.xpose.msra.mxu1 %v511_v42 }
 0x18d   : > { %1934 = vmatprep.subr.mxu1 %v2567_v32 }
 0x190   : > { %1935 = vmatpush3.xpose.msra.mxu1 %v1905_v39 }
 0x191   : > { %1936 = vmatprep.subr.mxu1 %v2567_v32 }
 0x194   : > { %1937 = vmatpush3.xpose.msra.mxu1 %v501_v40 }
 0x195   : > { %1938 = vmatprep.subr.mxu1 %v2567_v32 }
 0x198   : > { %1939 = vmatpush3.xpose.msra.mxu1 %v1902_v37 }
 0x199   : > { %1940 = vmatprep.subr.mxu1 %v2567_v32 }
 0x19c   : > { %1941 = vmatpush3.xpose.msra.mxu1 %v491_v38 }
 0x19d   : > { %1942 = vmatprep.subr.mxu1 %v2567_v32 }
 0x1a0   : > { %1943 = vmatpush3.xpose.msra.mxu1 %v1899_v35 }
 0x1a1   : > { %1944 = vmatprep.subr.mxu1 %v2567_v32 }
 0x1a4   : > { %1945 = vmatpush3.xpose.msra.mxu1 %v481_v36 }
 0x1a5   : > { %1946 = vmatprep.subr.mxu1 %v2567_v32 }
 0x1a8   : > { %1947 = vmatpush3.xpose.msra.mxu1 %v1896_v33 }
 0x1a9   : > { %1948 = vmatprep.subr.mxu1 %v2567_v32 }
 0x1ac   : > { %1949 = vmatpush3.xpose.msra.mxu1 %v471_v34 }
 0x1af   : > { %1951 = vmatmul.mubr.f32.vlgmr.msra.gmra.mxu1 %v566_v49 }
 0x26f   : > { %v633_v50 = vpop.f32.mrf.mxu1 }
 0x270   : > { %637 = vst [vmem:[#allocation4] sm:$0x1] %v633_v50 }
 0x271   : > { %v1952_v51 = vpop.f32.mrf.mxu1 }
 0x272 PF: > { %p638_p6 = scmp.eq.s32.totalorder %s2550_s24, 1 }
 0x273   : > { %v674_v52 = vld [vmem:[%s2777_s17 + $0x78] sm:$0xff] (%p638_p6)  ;;  %v673_v53 = vld [vmem:[%s2777_s17 + $0x70] sm:$0xff] (%p638_p6)  ;;  %v672_v54 = vld [vmem:[%s2777_s17 + $0x68] sm:$0xff] (%p638_p6)  ;;  %v2569_v20 = vmov (%p638_p6), 0.0   ;;  %vm2570_vm1 = vmmov (%p638_p6), 0  }
 0x274   : > { %642 = sbr.rel (!%p638_p6) target bundleno = 1139 (0x473), region = 72  ;;  %1953 = vmatprep.subr.mxu0 (%p638_p6), %v674_v52  ;;  %v671_v55 = vld [vmem:[%s2777_s17 + $0x60] sm:$0xff] (%p638_p6)  ;;  %v643_v56 = vld [vmem:[#allocation2 + $0x30] sm:$0xff] (%p638_p6)  ;;  %v670_v57 = vld [vmem:[%s2777_s17 + $0x58] sm:$0xff] (%p638_p6)  ;;  %2009 = vmatprep.subr.mxu1 (%p638_p6), %v2569_v20  ;;  %908 = vst [vmem:[#allocation14] sm:$0xff] (%p638_p6), %v2569_v20 }
 0x275   : > { %1954 = vmatpush3.msra.mxu0 (%p638_p6), %v674_v52  ;;  %1985 = vmatprep.mubr.f32.mxu0 (%p638_p6), %v643_v56  ;;  %v669_v58 = vld [vmem:[%s2777_s17 + $0x50] sm:$0xff] (%p638_p6)  ;;  %v668_v59 = vld [vmem:[%s2777_s17 + $0x48] sm:$0xff] (%p638_p6)  ;;  %v667_v60 = vld [vmem:[%s2777_s17 + $0x40] sm:$0xff] (%p638_p6) }
 0x276   : > { %1955 = vmatprep.subr.mxu0 (%p638_p6), %v673_v53  ;;  %v666_v61 = vld [vmem:[%s2777_s17 + $0x38] sm:$0xff] (%p638_p6)  ;;  %v665_v62 = vld [vmem:[%s2777_s17 + $0x30] sm:$0xff] (%p638_p6)  ;;  %v664_v63 = vld [vmem:[%s2777_s17 + $0x28] sm:$0xff] (%p638_p6)  ;;  %2041 = vmatprep.mubr.msk.f32.mxu1 (%p638_p6), %vm2570_vm1, %v2569_v20 }
 0x277   : > { %1956 = vmatpush3.msra.mxu0 (%p638_p6), %v673_v53  ;;  %v663_v0 = vld [vmem:[%s2777_s17 + $0x20] sm:$0xff] (%p638_p6)  ;;  %v662_v1 = vld [vmem:[%s2777_s17 + $0x18] sm:$0xff] (%p638_p6)  ;;  %v661_v2 = vld [vmem:[%s2777_s17 + $0x10] sm:$0xff] (%p638_p6) }
 0x278   : > { %1957 = vmatprep.subr.mxu0 (%p638_p6), %v672_v54  ;;  %v660_v3 = vld [vmem:[%s2777_s17 + $0x8] sm:$0xff] (%p638_p6)  ;;  %v659_v4 = vld [vmem:[%s2777_s17] sm:$0xff] (%p638_p6)  ;;  %v645_v6 = vld [vmem:[#allocation2 + $0x58] sm:$0xff] (%p638_p6) }
 0x279   : > { %1958 = vmatpush3.msra.mxu0 %v672_v54  ;;  %v644_v5 = vld [vmem:[#allocation2] sm:$0xff]  ;;  %v646_v7 = vld [vmem:[#allocation2 + $0x18] sm:$0xff]  ;;  %v647_v8 = vld [vmem:[#allocation2 + $0x50] sm:$0xff] }
 0x27a   : > { %1959 = vmatprep.subr.mxu0 %v671_v55  ;;  %v648_v9 = vld [vmem:[#allocation2 + $0x68] sm:$0xff]  ;;  %v651_v12 = vld [vmem:[#allocation2 + $0x40] sm:$0xff]  ;;  %v653_v14 = vld [vmem:[#allocation2 + $0x10] sm:$0xff] }
 0x27b   : > { %1960 = vmatpush3.msra.mxu0 %v671_v55  ;;  %v649_v10 = vld [vmem:[#allocation2 + $0x8] sm:$0xff]  ;;  %v652_v13 = vld [vmem:[#allocation2 + $0x20] sm:$0xff]  ;;  %v654_v15 = vld [vmem:[#allocation2 + $0x38] sm:$0xff] }
 0x27c   : > { %1961 = vmatprep.subr.mxu0 %v670_v57  ;;  %v650_v11 = vld [vmem:[#allocation2 + $0x48] sm:$0xff]  ;;  %v655_v16 = vld [vmem:[#allocation2 + $0x60] sm:$0xff]  ;;  %v656_v17 = vld [vmem:[#allocation2 + $0x70] sm:$0xff] }
 0x27d   : > { %1962 = vmatpush3.msra.mxu0 %v670_v57  ;;  %v657_v18 = vld [vmem:[#allocation2 + $0x78] sm:$0xff]  ;;  %v658_v19 = vld [vmem:[#allocation2 + $0x28] sm:$0xff]  ;;  %v836_v37 = vld [vmem:[%s2784_s16] sm:$0x1] }
 0x27e   : > { %1963 = vmatprep.subr.mxu0 %v669_v58 }
 0x27f   : > { %1964 = vmatpush3.msra.mxu0 %v669_v58 }
 0x280   : > { %1965 = vmatprep.subr.mxu0 %v668_v59 }
 0x281   : > { %1966 = vmatpush3.msra.mxu0 %v668_v59 }
 0x282   : > { %1967 = vmatprep.subr.mxu0 %v667_v60 }
 0x283   : > { %1968 = vmatpush3.msra.mxu0 %v667_v60 }
 0x284   : > { %1969 = vmatprep.subr.mxu0 %v666_v61 }
 0x285   : > { %1970 = vmatpush3.msra.mxu0 %v666_v61 }
 0x286   : > { %1971 = vmatprep.subr.mxu0 %v665_v62 }
 0x287   : > { %1972 = vmatpush3.msra.mxu0 %v665_v62 }
 0x288   : > { %1973 = vmatprep.subr.mxu0 %v664_v63 }
 0x289   : > { %1974 = vmatpush3.msra.mxu0 %v664_v63 }
 0x28a   : > { %1975 = vmatprep.subr.mxu0 %v663_v0 }
 0x28b   : > { %1976 = vmatpush3.msra.mxu0 %v663_v0 }
 0x28c   : > { %1977 = vmatprep.subr.mxu0 %v662_v1 }
 0x28d   : > { %1978 = vmatpush3.msra.mxu0 %v662_v1 }
 0x28e   : > { %1979 = vmatprep.subr.mxu0 %v661_v2 }
 0x28f   : > { %1980 = vmatpush3.msra.mxu0 %v661_v2 }
 0x290   : > { %1981 = vmatprep.subr.mxu0 %v660_v3 }
 0x291   : > { %1982 = vmatpush3.msra.mxu0 %v660_v3 }
 0x292   : > { %1983 = vmatprep.subr.mxu0 %v659_v4 }
 0x293   : > { %1984 = vmatpush3.msra.mxu0 %v659_v4 }
 0x294   : > { %1986 = vmatmul.mubr.f32.vlgmr.msra.gmra.mxu0 %v644_v5 }
 0x295   : > { %1988 = vmatprep.mubr.f32.mxu0 %v645_v6 }
 0x298   : > { %1989 = vmatmul.mubr.f32.gmra.mxu0 %v646_v7 }
 0x299   : > { %1991 = vmatprep.mubr.f32.mxu0 %v647_v8 }
 0x29c   : > { %1992 = vmatmul.mubr.f32.gmra.mxu0 %v648_v9 }
 0x29d   : > { %1994 = vmatprep.mubr.f32.mxu0 %v649_v10 }
 0x2a0   : > { %1995 = vmatmul.mubr.f32.gmra.mxu0 %v650_v11 }
 0x2a1   : > { %1997 = vmatprep.mubr.f32.mxu0 %v651_v12 }
 0x2a4   : > { %1998 = vmatmul.mubr.f32.gmra.mxu0 %v652_v13 }
 0x2a5   : > { %2000 = vmatprep.mubr.f32.mxu0 %v653_v14 }
 0x2a8   : > { %2001 = vmatmul.mubr.f32.gmra.mxu0 %v654_v15 }
 0x2a9   : > { %2003 = vmatprep.mubr.f32.mxu0 %v655_v16 }
 0x2ac   : > { %2004 = vmatmul.mubr.f32.gmra.mxu0 %v656_v17 }
 0x2ad   : > { %2006 = vmatprep.mubr.f32.mxu0 %v657_v18 }
 0x2b0   : > { %2007 = vmatmul.mubr.f32.gmra.mxu0 %v658_v19 }
 0x354   : > { %v1987_v21 = vpop.f32.mrf.mxu0 }
 0x355   : > { %821 = vst [vmem:[#allocation3 + $0x68] sm:$0xff] %v1987_v21 }
 0x356   : > { %v741_v22 = vpop.f32.mrf.mxu0 }
 0x357   : > { %820 = vst [vmem:[#allocation3 + $0x28] sm:$0xff] %v741_v22 }
 0x358   : > { %v1990_v23 = vpop.f32.mrf.mxu0 }
 0x359   : > { %823 = vst [vmem:[#allocation3 + $0x40] sm:$0xff] %v1990_v23 }
 0x35a   : > { %v751_v24 = vpop.f32.mrf.mxu0 }
 0x35b   : > { %822 = vst [vmem:[#allocation3 + $0x10] sm:$0xff] %v751_v24 }
 0x35c   : > { %v1993_v25 = vpop.f32.mrf.mxu0 }
 0x35d   : > { %825 = vst [vmem:[#allocation3 + $0x30] sm:$0xff] %v1993_v25 }
 0x35e   : > { %v761_v26 = vpop.f32.mrf.mxu0 }
 0x35f   : > { %824 = vst [vmem:[#allocation3 + $0x48] sm:$0xff] %v761_v26 }
 0x360   : > { %v1996_v27 = vpop.f32.mrf.mxu0 }
 0x361   : > { %827 = vst [vmem:[#allocation3 + $0x38] sm:$0xff] %v1996_v27 }
 0x362   : > { %v771_v28 = vpop.f32.mrf.mxu0 }
 0x363   : > { %826 = vst [vmem:[#allocation3 + $0x70] sm:$0xff] %v771_v28 }
 0x364   : > { %v1999_v29 = vpop.f32.mrf.mxu0 }
 0x365   : > { %829 = vst [vmem:[#allocation3 + $0x78] sm:$0xff] %v1999_v29 }
 0x366   : > { %v781_v30 = vpop.f32.mrf.mxu0 }
 0x367   : > { %828 = vst [vmem:[#allocation3 + $0x20] sm:$0xff] %v781_v30 }
 0x368   : > { %v2002_v31 = vpop.f32.mrf.mxu0 }
 0x369   : > { %831 = vst [vmem:[#allocation3 + $0x58] sm:$0xff] %v2002_v31 }
 0x36a   : > { %v791_v32 = vpop.f32.mrf.mxu0 }
 0x36b   : > { %830 = vst [vmem:[#allocation3 + $0x18] sm:$0xff] %v791_v32 }
 0x36c   : > { %v2005_v33 = vpop.f32.mrf.mxu0 }
 0x36d   : > { %833 = vst [vmem:[#allocation3 + $0x8] sm:$0xff] %v2005_v33 }
 0x36e   : > { %v801_v34 = vpop.f32.mrf.mxu0 }
 0x36f   : > { %832 = vst [vmem:[#allocation3] sm:$0xff] %v801_v34 }
 0x370   : > { %v2008_v35 = vpop.f32.mrf.mxu0 }
 0x371   : > { %835 = vst [vmem:[#allocation3 + $0x50] sm:$0xff] %v2008_v35  ;;  %2010 = vmatpush3.xpose.msra.mxu1 %v2008_v35 }
 0x372   : > { %v811_v36 = vpop.f32.mrf.mxu0  ;;  %2011 = vmatprep.subr.mxu1 %v2569_v20 }
 0x373   : > { %834 = vst [vmem:[#allocation3 + $0x60] sm:$0xff] %v811_v36 }
 0x375   : > { %2012 = vmatpush3.xpose.msra.mxu1 %v811_v36 }
 0x376   : > { %2013 = vmatprep.subr.mxu1 %v2569_v20 }
 0x379   : > { %2014 = vmatpush3.xpose.msra.mxu1 %v2005_v33 }
 0x37a   : > { %2015 = vmatprep.subr.mxu1 %v2569_v20 }
 0x37d   : > { %2016 = vmatpush3.xpose.msra.mxu1 %v801_v34 }
 0x37e   : > { %2017 = vmatprep.subr.mxu1 %v2569_v20 }
 0x381   : > { %2018 = vmatpush3.xpose.msra.mxu1 %v2002_v31 }
 0x382   : > { %2019 = vmatprep.subr.mxu1 %v2569_v20 }
 0x385   : > { %2020 = vmatpush3.xpose.msra.mxu1 %v791_v32 }
 0x386   : > { %2021 = vmatprep.subr.mxu1 %v2569_v20 }
 0x389   : > { %2022 = vmatpush3.xpose.msra.mxu1 %v1999_v29 }
 0x38a   : > { %2023 = vmatprep.subr.mxu1 %v2569_v20 }
 0x38d   : > { %2024 = vmatpush3.xpose.msra.mxu1 %v781_v30 }
 0x38e   : > { %2025 = vmatprep.subr.mxu1 %v2569_v20 }
 0x391   : > { %2026 = vmatpush3.xpose.msra.mxu1 %v1996_v27 }
 0x392   : > { %2027 = vmatprep.subr.mxu1 %v2569_v20 }
 0x395   : > { %2028 = vmatpush3.xpose.msra.mxu1 %v771_v28 }
 0x396   : > { %2029 = vmatprep.subr.mxu1 %v2569_v20 }
 0x399   : > { %2030 = vmatpush3.xpose.msra.mxu1 %v1993_v25 }
 0x39a   : > { %2031 = vmatprep.subr.mxu1 %v2569_v20 }
 0x39d   : > { %2032 = vmatpush3.xpose.msra.mxu1 %v761_v26 }
 0x39e   : > { %2033 = vmatprep.subr.mxu1 %v2569_v20 }
 0x3a1   : > { %2034 = vmatpush3.xpose.msra.mxu1 %v1990_v23 }
 0x3a2   : > { %2035 = vmatprep.subr.mxu1 %v2569_v20 }
 0x3a5   : > { %2036 = vmatpush3.xpose.msra.mxu1 %v751_v24 }
 0x3a6   : > { %2037 = vmatprep.subr.mxu1 %v2569_v20 }
 0x3a9   : > { %2038 = vmatpush3.xpose.msra.mxu1 %v1987_v21 }
 0x3aa   : > { %2039 = vmatprep.subr.mxu1 %v2569_v20 }
 0x3ad   : > { %2040 = vmatpush3.xpose.msra.mxu1 %v741_v22 }
 0x3b0   : > { %2042 = vmatmul.mubr.f32.vlgmr.msra.gmra.mxu1 %v836_v37 }
 0x470   : > { %v903_v38 = vpop.f32.mrf.mxu1 }
 0x471   : > { %907 = vst [vmem:[#allocation4] sm:$0x1] %v903_v38 }
 0x472   : > { %v2043_v39 = vpop.f32.mrf.mxu1 }
 0x473 PF: > { %v2866_v40 = vld [vmem:[#allocation3 + $0x28] sm:$0xff]  ;;  %v2869_v41 = vld [vmem:[%s2784_s16 + $0x1] ss:$0 sm:$0xff]  ;;  %v2879_v46 = vld [vmem:[#allocation3 + $0x78] sm:$0xff]  ;;  %p1706_p5 = scmp.ne.s32.totalorder %s2550_s24, 0 }
 0x474   : > { %v2871_v42 = vld [vmem:[#allocation3 + $0x68] sm:$0xff]  ;;  %v932_v43 = vmul.f32 %v2869_v41, %v2866_v40  ;;  %v2877_v45 = vld [vmem:[#allocation3 + $0x20] sm:$0xff]  ;;  %v941_v48 = vmul.f32 %v2869_v41, %v2879_v46  ;;  %v2885_v49 = vld [vmem:[#allocation3 + $0x10] sm:$0xff] }
 0x475   : > { %v933_v44 = vmul.f32 %v2869_v41, %v2871_v42  ;;  %v940_v47 = vmul.f32 %v2869_v41, %v2877_v45  ;;  %v921_v50 = vld [vmem:[#allocation3 + $0x18] sm:$0xff]  ;;  %v2887_v51 = vld [vmem:[#allocation3 + $0x50] sm:$0xff]  ;;  %v934_v52 = vmul.f32 %v2869_v41, %v2885_v49  ;;  %v2894_v54 = vld [vmem:[#allocation3 + $0x40] sm:$0xff] }
 0x476   : > { %948 = vadd.xlane.f32.xlu0 %v932_v43  ;;  %2044 = vmatprep.subr.mxu0 %v2887_v51  ;;  %v942_v53 = vmul.f32 %v2869_v41, %v921_v50  ;;  %v922_v55 = vld [vmem:[#allocation3 + $0x58] sm:$0xff]  ;;  %v925_v56 = vld [vmem:[#allocation3 + $0x60] sm:$0xff]  ;;  %v935_v57 = vmul.f32 %v2869_v41, %v2894_v54  ;;  %v924_v59 = vld [vmem:[#allocation3 + $0x8] sm:$0xff]  ;;  %v947_v8 = vmul.f32 %v2869_v41, %v2887_v51 }
 0x477   : > { %950 = vadd.xlane.f32.xlu1 %v933_v44  ;;  %2135 = vmatprep.subr.mxu1 %v2887_v51  ;;  %v943_v58 = vmul.f32 %v2869_v41, %v922_v55  ;;  %v915_v60 = vld [vmem:[#allocation3 + $0x48] sm:$0xff]  ;;  %v923_v61 = vld [vmem:[#allocation3] sm:$0xff]  ;;  %v916_v0 = vld [vmem:[#allocation3 + $0x30] sm:$0xff]  ;;  %v945_v2 = vmul.f32 %v2869_v41, %v924_v59  ;;  %v946_v5 = vmul.f32 %v2869_v41, %v925_v56 }
 0x478   : > { %2045 = vmatpush3.msra.mxu0 %v2887_v51  ;;  %2151 = vmatpush3.msra.mxu1 %v2887_v51  ;;  %v936_v62 = vmul.f32 %v2869_v41, %v915_v60  ;;  %v944_v63 = vmul.f32 %v2869_v41, %v923_v61  ;;  %v937_v1 = vmul.f32 %v2869_v41, %v916_v0  ;;  %v917_v3 = vld [vmem:[#allocation3 + $0x70] sm:$0xff]  ;;  %v918_v6 = vld [vmem:[#allocation3 + $0x38] sm:$0xff]  ;;  %v984_v9 = vld [vmem:[#allocation13] sm:$0xff] }
 0x479   : > { %2046 = vmatprep.subr.mxu0 %v925_v56  ;;  %2136 = vmatprep.subr.mxu1 %v925_v56  ;;  %v938_v4 = vmul.f32 %v2869_v41, %v917_v3  ;;  %v939_v7 = vmul.f32 %v2869_v41, %v918_v6  ;;  %v988_v10 = vunpack.c.0.s8 %v984_v9  ;;  %v2934_v11 = vld [vmem:[#allocation13 + $0x10] sm:$0xff]  ;;  %v2936_v12 = vld [vmem:[#allocation4] ss:$0 sm:$0xff]  ;;  %v989_v13 = vunpack.c.1.s8 %v984_v9  ;;  %v2948_v39 = vld [vmem:[#allocation13 + $0x8] sm:$0xff] }
 0x47a   : > { %964 = vadd.xlane.f32.xlu0 %v940_v47  ;;  %2047 = vmatpush3.msra.mxu0 %v925_v56  ;;  %v996_v14 = vunpack.c.0.s8 %v2934_v11  ;;  %v997_v18 = vunpack.c.1.s8 %v2934_v11  ;;  %v990_v23 = vunpack.c.2.s8 %v984_v9  ;;  %v998_v29 = vunpack.c.2.s8 %v2934_v11 }
 0x47b   : > { %966 = vadd.xlane.f32.xlu1 %v941_v48  ;;  %2152 = vmatpush3.msra.mxu1 %v925_v56  ;;  %v1004_v15 = vcvt.s32.f32 %v988_v10  ;;  %v1005_v21 = vcvt.s32.f32 %v989_v13  ;;  %v991_v30 = vunpack.c.3.s8 %v984_v9  ;;  %v999_v47 = vunpack.c.3.s8 %v2934_v11  ;;  %v2953_v48 = vld [vmem:[#allocation13 + $0x18] sm:$0xff] }
 0x47c   : > { %2048 = vmatprep.subr.mxu0 %v924_v59  ;;  %2137 = vmatprep.subr.mxu1 %v924_v59  ;;  %v1012_v22 = vcvt.s32.f32 %v996_v14  ;;  %v1013_v28 = vcvt.s32.f32 %v997_v18  ;;  %v1006_v35 = vcvt.s32.f32 %v990_v23  ;;  %v992_v51 = vunpack.c.0.s8 %v2948_v39 }
 0x47d   : > { %2049 = vmatpush3.msra.mxu0 %v924_v59  ;;  %2153 = vmatpush3.msra.mxu1 %v924_v59  ;;  %vm1091_vm3 = vcmp.gt.f32.partialorder %v1004_v15, 0.0  ;;  %vm1092_vm5 = vcmp.gt.f32.partialorder %v1005_v21, 0.0  ;;  %v1007_v43 = vcvt.s32.f32 %v991_v30  ;;  %v994_v9 = vunpack.c.2.s8 %v2948_v39 }
 0x47e   : > { %952 = vadd.xlane.f32.xlu0 %v934_v52  ;;  %2050 = vmatprep.subr.mxu0 %v923_v61  ;;  %vm1099_vm6 = vcmp.gt.f32.partialorder %v1012_v22, 0.0  ;;  %vm1100_vm9 = vcmp.gt.f32.partialorder %v1013_v28, 0.0  ;;  %vm1093_vm10 = vcmp.gt.f32.partialorder %v1006_v35, 0.0  ;;  %v995_v30 = vunpack.c.3.s8 %v2948_v39 }
 0x47f   : > { %968 = vadd.xlane.f32.xlu1 %v942_v53  ;;  %2138 = vmatprep.subr.mxu1 %v923_v61  ;;  %vm1094_vm14 = vcmp.gt.f32.partialorder %v1007_v43, 0.0  ;;  %v1010_v23 = vcvt.s32.f32 %v994_v9 }
 0x480   : > { %2051 = vmatpush3.msra.mxu0 %v923_v61  ;;  %2154 = vmatpush3.msra.mxu1 %v923_v61  ;;  %v1015_v61 = vcvt.s32.f32 %v999_v47  ;;  %v1011_v43 = vcvt.s32.f32 %v995_v30 }
 0x481   : > { %2052 = vmatprep.subr.mxu0 %v922_v55  ;;  %2139 = vmatprep.subr.mxu1 %v922_v55 }
 0x482   : > { %954 = vadd.xlane.f32.xlu0 %v935_v57  ;;  %2053 = vmatpush3.msra.mxu0 %v922_v55  ;;  %v1000_v57 = vunpack.c.0.s8 %v2953_v48  ;;  %vm1102_vm1 = vcmp.gt.f32.partialorder %v1015_v61, 0.0 }
 0x483   : > { %970 = vadd.xlane.f32.xlu1 %v943_v58  ;;  %2155 = vmatpush3.msra.mxu1 %v922_v55 }
 0x484   : > { %2054 = vmatprep.subr.mxu0 %v921_v50  ;;  %2140 = vmatprep.subr.mxu1 %v921_v50 }
 0x485   : > { %2055 = vmatpush3.msra.mxu0 %v921_v50  ;;  %2156 = vmatpush3.msra.mxu1 %v921_v50 }
 0x486   : > { %956 = vadd.xlane.f32.xlu0 %v936_v62  ;;  %2056 = vmatprep.subr.mxu0 %v2879_v46 }
 0x487   : > { %972 = vadd.xlane.f32.xlu1 %v944_v63  ;;  %2141 = vmatprep.subr.mxu1 %v2879_v46 }
 0x488   : > { %2057 = vmatpush3.msra.mxu0 %v2879_v46  ;;  %2157 = vmatpush3.msra.mxu1 %v2879_v46 }
 0x489   : > { %2058 = vmatprep.subr.mxu0 %v2877_v45  ;;  %2142 = vmatprep.subr.mxu1 %v2877_v45 }
 0x48a   : > { %958 = vadd.xlane.f32.xlu0 %v937_v1  ;;  %2059 = vmatpush3.msra.mxu0 %v2877_v45  ;;  %v993_v1 = vunpack.c.1.s8 %v2948_v39 }
 0x48b   : > { %974 = vadd.xlane.f32.xlu1 %v945_v2  ;;  %2158 = vmatpush3.msra.mxu1 %v2877_v45 }
 0x48c   : > { %2060 = vmatprep.subr.mxu0 %v918_v6  ;;  %2143 = vmatprep.subr.mxu1 %v918_v6 }
 0x48d   : > { %2061 = vmatpush3.msra.mxu0 %v918_v6  ;;  %2159 = vmatpush3.msra.mxu1 %v918_v6 }
 0x48e   : > { %960 = vadd.xlane.f32.xlu0 %v938_v4  ;;  %2062 = vmatprep.subr.mxu0 %v917_v3 }
 0x48f   : > { %976 = vadd.xlane.f32.xlu1 %v946_v5  ;;  %2144 = vmatprep.subr.mxu1 %v917_v3 }
 0x490   : > { %2063 = vmatpush3.msra.mxu0 %v917_v3  ;;  %2160 = vmatpush3.msra.mxu1 %v917_v3 }
 0x491   : > { %2064 = vmatprep.subr.mxu0 %v916_v0  ;;  %2145 = vmatprep.subr.mxu1 %v916_v0 }
 0x492   : > { %962 = vadd.xlane.f32.xlu0 %v939_v7  ;;  %2065 = vmatpush3.msra.mxu0 %v916_v0  ;;  %v1016_v7 = vcvt.s32.f32 %v1000_v57 }
 0x493   : > { %978 = vadd.xlane.f32.xlu1 %v947_v8  ;;  %2161 = vmatpush3.msra.mxu1 %v916_v0  ;;  %v1008_v0 = vcvt.s32.f32 %v992_v51  ;;  %v1001_v8 = vunpack.c.1.s8 %v2953_v48 }
 0x494   : > { %2066 = vmatprep.subr.mxu0 %v915_v60  ;;  %2146 = vmatprep.subr.mxu1 %v915_v60 }
 0x495   : > { %2067 = vmatpush3.msra.mxu0 %v915_v60  ;;  %2162 = vmatpush3.msra.mxu1 %v915_v60  ;;  %v1017_v22 = vcvt.s32.f32 %v1001_v8 }
 0x496   : > { %2068 = vmatprep.subr.mxu0 %v2894_v54  ;;  %2147 = vmatprep.subr.mxu1 %v2894_v54 }
 0x497   : > { %2069 = vmatpush3.msra.mxu0 %v2894_v54  ;;  %2163 = vmatpush3.msra.mxu1 %v2894_v54 }
 0x498   : > { %2070 = vmatprep.subr.mxu0 %v2885_v49  ;;  %2148 = vmatprep.subr.mxu1 %v2885_v49 }
 0x499   : > { %2071 = vmatpush3.msra.mxu0 %v2885_v49  ;;  %2164 = vmatpush3.msra.mxu1 %v2885_v49 }
 0x49a   : > { %2072 = vmatprep.subr.mxu0 %v2871_v42  ;;  %2149 = vmatprep.subr.mxu1 %v2871_v42 }
 0x49b   : > { %2073 = vmatpush3.msra.mxu0 %v2871_v42  ;;  %2165 = vmatpush3.msra.mxu1 %v2871_v42  ;;  %v1014_v42 = vcvt.s32.f32 %v998_v29 }
 0x49c   : > { %2074 = vmatprep.subr.mxu0 %v2866_v40  ;;  %2150 = vmatprep.subr.mxu1 %v2866_v40 }
 0x49d   : > { %2075 = vmatpush3.msra.mxu0 %v2866_v40  ;;  %2166 = vmatpush3.msra.mxu1 %v2866_v40  ;;  %vm1101_vm13 = vcmp.gt.f32.partialorder %v1014_v42, 0.0 }
 0x4ff   : > { %v949_v16 = vpop.xlane.xlu0 %948 }
 0x500   : > { %v951_v17 = vpop.xlane.xlu1 %950  ;;  %v1027_v19 = vadd.f32 %v2936_v12, %v949_v16  ;;  %v1009_v16 = vcvt.s32.f32 %v993_v1 }
 0x501   : > { %v1028_v20 = vadd.f32 %v2936_v12, %v951_v17 }
 0x502   : > { %v1059_v24 = vmul.f32 0.2, %v1027_v19  ;;  %vm1043_vm2 = vcmp.gt.f32.partialorder %v1027_v19, 0.0 }
 0x503   : > { %v1060_v25 = vmul.f32 0.2, %v1028_v20  ;;  %v965_v26 = vpop.xlane.xlu0 %964  ;;  %vm1044_vm4 = vcmp.gt.f32.partialorder %v1028_v20, 0.0 }
 0x504   : > { %v967_v27 = vpop.xlane.xlu1 %966  ;;  %v1035_v31 = vadd.f32 %v2936_v12, %v965_v26  ;;  %v1075_v33 = vsel %vm1043_vm2, %v1027_v19, %v1059_v24  ;;  %vm1095_vm2 = vcmp.gt.f32.partialorder %v1008_v0, 0.0 }
 0x505   : > { %v1036_v32 = vadd.f32 %v2936_v12, %v967_v27  ;;  %v2945_v34 = vsel %vm1091_vm3, %v1075_v33, -1e+30  ;;  %v1076_v38 = vsel %vm1044_vm4, %v1028_v20, %v1060_v25  ;;  %v1002_v27 = vunpack.c.2.s8 %v2953_v48 }
 0x506   : > { %v1067_v36 = vmul.f32 0.2, %v1035_v31  ;;  %1123 = vmax.xlane.f32.xlu0 %v2945_v34  ;;  %vm1051_vm7 = vcmp.gt.f32.partialorder %v1035_v31, 0.0  ;;  %v2956_v49 = vsel %vm1092_vm5, %v1076_v38, -1e+30  ;;  %vm1103_vm5 = vcmp.gt.f32.partialorder %v1016_v7, 0.0 }
 0x507   : > { %v1068_v37 = vmul.f32 0.2, %v1036_v32  ;;  %v953_v40 = vpop.xlane.xlu0 %952  ;;  %vm1052_vm8 = vcmp.gt.f32.partialorder %v1036_v32, 0.0  ;;  %v1018_v39 = vcvt.s32.f32 %v1002_v27 }
 0x508   : > { %v969_v41 = vpop.xlane.xlu1 %968  ;;  %v1029_v44 = vadd.f32 %v2936_v12, %v953_v40  ;;  %v1083_v46 = vsel %vm1051_vm7, %v1035_v31, %v1067_v36 }
 0x509   : > { %v1037_v45 = vadd.f32 %v2936_v12, %v969_v41  ;;  %v2959_v50 = vsel %vm1099_vm6, %v1083_v46, -1e+30  ;;  %v1084_v54 = vsel %vm1052_vm8, %v1036_v32, %v1068_v37  ;;  %vm1096_vm6 = vcmp.gt.f32.partialorder %v1009_v16, 0.0 }
 0x50a   : > { %v1061_v52 = vmul.f32 0.2, %v1029_v44  ;;  %1125 = vmax.xlane.f32.xlu0 %v2956_v49  ;;  %1139 = vmax.xlane.f32.xlu1 %v2959_v50  ;;  %vm1045_vm11 = vcmp.gt.f32.partialorder %v1029_v44, 0.0  ;;  %v2969_v62 = vsel %vm1100_vm9, %v1084_v54, -1e+30  ;;  %vm1104_vm9 = vcmp.gt.f32.partialorder %v1017_v22, 0.0 }
 0x50b   : > { %v1069_v53 = vmul.f32 0.2, %v1037_v45  ;;  %v955_v55 = vpop.xlane.xlu0 %954  ;;  %vm1053_vm12 = vcmp.gt.f32.partialorder %v1037_v45, 0.0 }
 0x50c   : > { %v971_v56 = vpop.xlane.xlu1 %970  ;;  %v1030_v58 = vadd.f32 %v2936_v12, %v955_v55  ;;  %v1077_v60 = vsel %vm1045_vm11, %v1029_v44, %v1061_v52  ;;  %v1003_v44 = vunpack.c.3.s8 %v2953_v48 }
 0x50d   : > { %v1038_v59 = vadd.f32 %v2936_v12, %v971_v56  ;;  %v2972_v63 = vsel %vm1093_vm10, %v1077_v60, -1e+30  ;;  %v1085_v4 = vsel %vm1053_vm12, %v1037_v45, %v1069_v53  ;;  %vm1097_vm10 = vcmp.gt.f32.partialorder %v1010_v23, 0.0 }
 0x50e   : > { %v1062_v2 = vmul.f32 0.2, %v1030_v58  ;;  %1141 = vmax.xlane.f32.xlu1 %v2969_v62  ;;  %1127 = vmax.xlane.f32.xlu0 %v2972_v63  ;;  %vm1046_vm15 = vcmp.gt.f32.partialorder %v1030_v58, 0.0  ;;  %v2983_v14 = vsel %vm1101_vm13, %v1085_v4, -1e+30  ;;  %vm1105_vm13 = vcmp.gt.f32.partialorder %v1018_v39, 0.0 }
 0x50f   : > { %v1070_v3 = vmul.f32 0.2, %v1038_v59  ;;  %v957_v5 = vpop.xlane.xlu0 %956  ;;  %vm1054_vm0 = vcmp.gt.f32.partialorder %v1038_v59, 0.0  ;;  %v1019_v57 = vcvt.s32.f32 %v1003_v44 }
 0x510   : > { %v973_v6 = vpop.xlane.xlu1 %972  ;;  %v1031_v10 = vadd.f32 %v2936_v12, %v957_v5  ;;  %v1078_v13 = vsel %vm1046_vm15, %v1030_v58, %v1062_v2 }
 0x511   : > { %v1039_v11 = vadd.f32 %v2936_v12, %v973_v6  ;;  %v2986_v15 = vsel %vm1094_vm14, %v1078_v13, -1e+30  ;;  %v1086_v19 = vsel %vm1054_vm0, %v1038_v59, %v1070_v3  ;;  %vm1098_vm14 = vcmp.gt.f32.partialorder %v1011_v43, 0.0 }
 0x512   : > { %v1063_v17 = vmul.f32 0.2, %v1031_v10  ;;  %1143 = vmax.xlane.f32.xlu1 %v2983_v14  ;;  %1129 = vmax.xlane.f32.xlu0 %v2986_v15  ;;  %vm1047_vm3 = vcmp.gt.f32.partialorder %v1031_v10, 0.0  ;;  %v2995_v28 = vsel %vm1102_vm1, %v1086_v19, -1e+30  ;;  %vm1106_vm1 = vcmp.gt.f32.partialorder %v1019_v57, 0.0 }
 0x513   : > { %v1071_v18 = vmul.f32 0.2, %v1039_v11  ;;  %v959_v20 = vpop.xlane.xlu0 %958  ;;  %vm1055_vm4 = vcmp.gt.f32.partialorder %v1039_v11, 0.0 }
 0x514   : > { %v975_v21 = vpop.xlane.xlu1 %974  ;;  %v1032_v24 = vadd.f32 %v2936_v12, %v959_v20  ;;  %v1079_v26 = vsel %vm1047_vm3, %v1031_v10, %v1063_v17 }
 0x515   : > { %v1040_v25 = vadd.f32 %v2936_v12, %v975_v21  ;;  %v2998_v29 = vsel %vm1095_vm2, %v1079_v26, -1e+30  ;;  %v1087_v33 = vsel %vm1055_vm4, %v1039_v11, %v1071_v18 }
 0x516   : > { %v1064_v31 = vmul.f32 0.2, %v1032_v24  ;;  %1145 = vmax.xlane.f32.xlu1 %v2995_v28  ;;  %1131 = vmax.xlane.f32.xlu0 %v2998_v29  ;;  %vm1048_vm7 = vcmp.gt.f32.partialorder %v1032_v24, 0.0  ;;  %v3007_v41 = vsel %vm1103_vm5, %v1087_v33, -1e+30 }
 0x517   : > { %v1072_v32 = vmul.f32 0.2, %v1040_v25  ;;  %v961_v35 = vpop.xlane.xlu0 %960  ;;  %vm1056_vm8 = vcmp.gt.f32.partialorder %v1040_v25, 0.0 }
 0x518   : > { %v977_v36 = vpop.xlane.xlu1 %976  ;;  %v1033_v37 = vadd.f32 %v2936_v12, %v961_v35  ;;  %v1080_v40 = vsel %vm1048_vm7, %v1032_v24, %v1064_v31 }
 0x519   : > { %v1041_v38 = vadd.f32 %v2936_v12, %v977_v36  ;;  %v3010_v42 = vsel %vm1096_vm6, %v1080_v40, -1e+30  ;;  %v1088_v47 = vsel %vm1056_vm8, %v1040_v25, %v1072_v32 }
 0x51a   : > { %v1065_v45 = vmul.f32 0.2, %v1033_v37  ;;  %1147 = vmax.xlane.f32.xlu1 %v3007_v41  ;;  %1133 = vmax.xlane.f32.xlu0 %v3010_v42  ;;  %vm1049_vm11 = vcmp.gt.f32.partialorder %v1033_v37, 0.0  ;;  %v3018_v56 = vsel %vm1104_vm9, %v1088_v47, -1e+30 }
 0x51b   : > { %v1073_v46 = vmul.f32 0.2, %v1041_v38  ;;  %v963_v51 = vpop.xlane.xlu0 %962  ;;  %vm1057_vm12 = vcmp.gt.f32.partialorder %v1041_v38, 0.0 }
 0x51c   : > { %v979_v52 = vpop.xlane.xlu1 %978  ;;  %v1034_v53 = vadd.f32 %v2936_v12, %v963_v51  ;;  %v1081_v55 = vsel %vm1049_vm11, %v1033_v37, %v1065_v45 }
 0x51d   : > { %v1042_v54 = vadd.f32 %v2936_v12, %v979_v52  ;;  %v3021_v48 = vsel %vm1097_vm10, %v1081_v55, -1e+30  ;;  %v1089_v60 = vsel %vm1057_vm12, %v1041_v38, %v1073_v46 }
 0x51e   : > { %v1066_v58 = vmul.f32 0.2, %v1034_v53  ;;  %1149 = vmax.xlane.f32.xlu1 %v3018_v56  ;;  %1135 = vmax.xlane.f32.xlu0 %v3021_v48  ;;  %vm1050_vm15 = vcmp.gt.f32.partialorder %v1034_v53, 0.0  ;;  %v3025_v61 = vsel %vm1105_vm13, %v1089_v60, -1e+30 }
 0x51f   : > { %v1074_v59 = vmul.f32 0.2, %v1042_v54  ;;  %vm1058_vm0 = vcmp.gt.f32.partialorder %v1042_v54, 0.0 }
 0x520   : > { %v1082_v12 = vsel %vm1050_vm15, %v1034_v53, %v1066_v58 }
 0x521   : > { %v3027_v0 = vsel %vm1098_vm14, %v1082_v12, -1e+30  ;;  %v1090_v1 = vsel %vm1058_vm0, %v1042_v54, %v1074_v59 }
 0x522   : > { %1151 = vmax.xlane.f32.xlu1 %v3025_v61  ;;  %1137 = vmax.xlane.f32.xlu0 %v3027_v0  ;;  %v3031_v2 = vsel %vm1106_vm1, %v1090_v1, -1e+30 }
 0x526   : > { %1153 = vmax.xlane.f32.xlu1 %v3031_v2 }
 0x58f   : > { %v1124_v3 = vpop.xlane.xlu0 %1123 }
 0x590   : > { %v1155_v4 = vsub.f32 %v2945_v34, %v1124_v3 }
 0x592   : > { %v1171_v5 = vmul.f32 1.442695, %v1155_v4 }
 0x593   : > { %v1140_v6 = vpop.xlane.xlu1 %1139  ;;  %v1126_v7 = vpop.xlane.xlu0 %1125 }
 0x594   : > { %2268 = vpow2.f32 %v1171_v5  ;;  %v1163_v8 = vsub.f32 %v2959_v50, %v1140_v6  ;;  %v1156_v9 = vsub.f32 %v2956_v49, %v1126_v7 }
 0x596   : > { %v1187_v10 = vmul.f32 1.442695, %v1163_v8  ;;  %v1173_v11 = vmul.f32 1.442695, %v1156_v9 }
 0x597   : > { %v1142_v13 = vpop.xlane.xlu1 %1141  ;;  %v1128_v16 = vpop.xlane.xlu0 %1127 }
 0x598   : > { %2270 = vpow2.f32 %v1187_v10  ;;  %v1164_v17 = vsub.f32 %v2969_v62, %v1142_v13  ;;  %v1157_v18 = vsub.f32 %v2972_v63, %v1128_v16 }
 0x599   : > { %2272 = vpow2.f32 %v1173_v11 }
 0x59a   : > { %v1189_v19 = vmul.f32 1.442695, %v1164_v17  ;;  %v1175_v34 = vmul.f32 1.442695, %v1157_v18 }
 0x59b   : > { %v1144_v20 = vpop.xlane.xlu1 %1143  ;;  %v1130_v21 = vpop.xlane.xlu0 %1129 }
 0x59c   : > { %2274 = vpow2.f32 %v1189_v19  ;;  %v1165_v22 = vsub.f32 %v2983_v14, %v1144_v20  ;;  %v1158_v50 = vsub.f32 %v2986_v15, %v1130_v21 }
 0x59d   : > { %2276 = vpow2.f32 %v1175_v34 }
 0x59e   : > { %v1191_v49 = vmul.f32 1.442695, %v1165_v22  ;;  %v1177_v23 = vmul.f32 1.442695, %v1158_v50 }
 0x59f   : > { %v1146_v24 = vpop.xlane.xlu1 %1145  ;;  %v1132_v25 = vpop.xlane.xlu0 %1131 }
 0x5a0   : > { %2278 = vpow2.f32 %v1191_v49  ;;  %v1166_v62 = vsub.f32 %v2995_v28, %v1146_v24  ;;  %v1159_v63 = vsub.f32 %v2998_v29, %v1132_v25 }
 0x5a1   : > { %v3043_v26 = vpop.eup %2268  ;;  %2280 = vpow2.f32 %v1177_v23 }
 0x5a2   : > { %v1193_v27 = vmul.f32 1.442695, %v1166_v62  ;;  %v1179_v30 = vmul.f32 1.442695, %v1159_v63  ;;  %1203 = vadd.xlane.f32.xlu0 %v3043_v26 }
 0x5a3   : > { %v1148_v14 = vpop.xlane.xlu1 %1147  ;;  %v1134_v31 = vpop.xlane.xlu0 %1133 }
 0x5a4   : > { %2282 = vpow2.f32 %v1193_v27  ;;  %v1167_v15 = vsub.f32 %v3007_v41, %v1148_v14  ;;  %v1160_v32 = vsub.f32 %v3010_v42, %v1134_v31 }
 0x5a5   : > { %v3048_v33 = vpop.eup %2270  ;;  %2284 = vpow2.f32 %v1179_v30 }
 0x5a6   : > { %v3050_v28 = vpop.eup %2272  ;;  %v1195_v29 = vmul.f32 1.442695, %v1167_v15  ;;  %v1181_v35 = vmul.f32 1.442695, %v1160_v32  ;;  %1219 = vadd.xlane.f32.xlu1 %v3048_v33 }
 0x5a7   : > { %1205 = vadd.xlane.f32.xlu0 %v3050_v28  ;;  %v1150_v36 = vpop.xlane.xlu1 %1149  ;;  %v1136_v37 = vpop.xlane.xlu0 %1135 }
 0x5a8   : > { %2286 = vpow2.f32 %v1195_v29  ;;  %v1168_v38 = vsub.f32 %v3018_v56, %v1150_v36  ;;  %v1161_v40 = vsub.f32 %v3021_v48, %v1136_v37 }
 0x5a9   : > { %v3056_v39 = vpop.eup %2274  ;;  %2288 = vpow2.f32 %v1181_v35 }
 0x5aa   : > { %v3058_v41 = vpop.eup %2276  ;;  %v1197_v42 = vmul.f32 1.442695, %v1168_v38  ;;  %v1183_v43 = vmul.f32 1.442695, %v1161_v40  ;;  %1221 = vadd.xlane.f32.xlu1 %v3056_v39 }
 0x5ab   : > { %1207 = vadd.xlane.f32.xlu0 %v3058_v41  ;;  %v1152_v44 = vpop.xlane.xlu1 %1151  ;;  %v1138_v45 = vpop.xlane.xlu0 %1137 }
 0x5ac   : > { %2290 = vpow2.f32 %v1197_v42  ;;  %v1169_v46 = vsub.f32 %v3025_v61, %v1152_v44  ;;  %v1162_v47 = vsub.f32 %v3027_v0, %v1138_v45 }
 0x5ad   : > { %v3064_v51 = vpop.eup %2278  ;;  %2292 = vpow2.f32 %v1183_v43 }
 0x5ae   : > { %v3066_v52 = vpop.eup %2280  ;;  %v1199_v53 = vmul.f32 1.442695, %v1169_v46  ;;  %v1185_v54 = vmul.f32 1.442695, %v1162_v47  ;;  %1223 = vadd.xlane.f32.xlu1 %v3064_v51 }
 0x5af   : > { %1209 = vadd.xlane.f32.xlu0 %v3066_v52  ;;  %v1154_v55 = vpop.xlane.xlu1 %1153 }
 0x5b0   : > { %2294 = vpow2.f32 %v1199_v53  ;;  %v1170_v56 = vsub.f32 %v3031_v2, %v1154_v55 }
 0x5b1   : > { %v3071_v48 = vpop.eup %2282  ;;  %2296 = vpow2.f32 %v1185_v54 }
 0x5b2   : > { %v3073_v57 = vpop.eup %2284  ;;  %v1201_v58 = vmul.f32 1.442695, %v1170_v56  ;;  %1225 = vadd.xlane.f32.xlu1 %v3071_v48 }
 0x5b3   : > { %1211 = vadd.xlane.f32.xlu0 %v3073_v57 }
 0x5b4   : > { %2298 = vpow2.f32 %v1201_v58 }
 0x5b5   : > { %v3077_v59 = vpop.eup %2286 }
 0x5b6   : > { %v3079_v60 = vpop.eup %2288  ;;  %1227 = vadd.xlane.f32.xlu1 %v3077_v59 }
 0x5b7   : > { %1213 = vadd.xlane.f32.xlu0 %v3079_v60 }
 0x5b9   : > { %v3083_v12 = vpop.eup %2290 }
 0x5ba   : > { %v3085_v61 = vpop.eup %2292  ;;  %1229 = vadd.xlane.f32.xlu1 %v3083_v12 }
 0x5bb   : > { %1215 = vadd.xlane.f32.xlu0 %v3085_v61 }
 0x5bd   : > { %v3089_v0 = vpop.eup %2294 }
 0x5be   : > { %v3091_v1 = vpop.eup %2296  ;;  %1231 = vadd.xlane.f32.xlu1 %v3089_v0 }
 0x5bf   : > { %1217 = vadd.xlane.f32.xlu0 %v3091_v1 }
 0x5c1   : > { %v3095_v2 = vpop.eup %2298 }
 0x5c2   : > { %1233 = vadd.xlane.f32.xlu1 %v3095_v2 }
 0x62b   : > { %v1204_v3 = vpop.xlane.xlu0 %1203 }
 0x62c   : > { %2300 = vrcp.f32 %v1204_v3 }
 0x62f   : > { %v1220_v4 = vpop.xlane.xlu1 %1219 }
 0x630   : > { %2302 = vrcp.f32 %v1220_v4  ;;  %v1206_v5 = vpop.xlane.xlu0 %1205 }
 0x631   : > { %2304 = vrcp.f32 %v1206_v5 }
 0x633   : > { %v1222_v6 = vpop.xlane.xlu1 %1221 }
 0x634   : > { %2306 = vrcp.f32 %v1222_v6  ;;  %v1208_v7 = vpop.xlane.xlu0 %1207 }
 0x635   : > { %2308 = vrcp.f32 %v1208_v7 }
 0x637   : > { %v1224_v8 = vpop.xlane.xlu1 %1223 }
 0x638   : > { %2310 = vrcp.f32 %v1224_v8  ;;  %v1210_v9 = vpop.xlane.xlu0 %1209 }
 0x639   : > { %v2301_v10 = vpop.eup %2300  ;;  %2312 = vrcp.f32 %v1210_v9 }
 0x63a   : > { %v1251_v11 = vmul.f32 %v2301_v10, %v3043_v26 }
 0x63b   : > { %v1226_v13 = vpop.xlane.xlu1 %1225 }
 0x63c   : > { %2314 = vrcp.f32 %v1226_v13  ;;  %v1212_v16 = vpop.xlane.xlu0 %1211  ;;  %2076 = vmatprep.mubr.f32.mxu0 %v1251_v11 }
 0x63d   : > { %v2303_v17 = vpop.eup %2302  ;;  %2316 = vrcp.f32 %v1212_v16 }
 0x63e   : > { %v2305_v18 = vpop.eup %2304  ;;  %v1259_v19 = vmul.f32 %v2303_v17, %v3048_v33 }
 0x63f   : > { %v1228_v34 = vpop.xlane.xlu1 %1227  ;;  %v1252_v20 = vmul.f32 %v2305_v18, %v3050_v28 }
 0x640   : > { %2318 = vrcp.f32 %v1228_v34  ;;  %v1214_v21 = vpop.xlane.xlu0 %1213  ;;  %2088 = vmatprep.mubr.f32.mxu1 %v1259_v19 }
 0x641   : > { %v2307_v22 = vpop.eup %2306  ;;  %2320 = vrcp.f32 %v1214_v21  ;;  %2077 = vmatmul.mubr.f32.vlgmr.msra.gmra.mxu0 %v1252_v20 }
 0x642   : > { %v2309_v50 = vpop.eup %2308  ;;  %v1260_v49 = vmul.f32 %v2307_v22, %v3056_v39 }
 0x643   : > { %v1230_v23 = vpop.xlane.xlu1 %1229  ;;  %v1253_v24 = vmul.f32 %v2309_v50, %v3058_v41 }
 0x644   : > { %2322 = vrcp.f32 %v1230_v23  ;;  %v1216_v25 = vpop.xlane.xlu0 %1215  ;;  %2089 = vmatmul.mubr.f32.vlgmr.msra.gmra.mxu1 %v1260_v49 }
 0x645   : > { %v2311_v62 = vpop.eup %2310  ;;  %2324 = vrcp.f32 %v1216_v25  ;;  %2079 = vmatprep.mubr.f32.mxu0 %v1253_v24 }
 0x646   : > { %v2313_v63 = vpop.eup %2312  ;;  %v1261_v26 = vmul.f32 %v2311_v62, %v3064_v51  ;;  %v1705_v51 = vld [vmem:[%s330_s15] ss:$0 sm:$0xff] }
 0x647   : > { %v1232_v27 = vpop.xlane.xlu1 %1231  ;;  %v1254_v30 = vmul.f32 %v2313_v63, %v3066_v52 }
 0x648   : > { %2326 = vrcp.f32 %v1232_v27  ;;  %v1218_v14 = vpop.xlane.xlu0 %1217  ;;  %2091 = vmatprep.mubr.f32.mxu1 %v1261_v26 }
 0x649   : > { %v2315_v31 = vpop.eup %2314  ;;  %2328 = vrcp.f32 %v1218_v14  ;;  %2080 = vmatmul.mubr.f32.gmra.mxu0 %v1254_v30 }
 0x64a   : > { %v2317_v15 = vpop.eup %2316  ;;  %v1262_v32 = vmul.f32 %v2315_v31, %v3071_v48 }
 0x64b   : > { %v1234_v33 = vpop.xlane.xlu1 %1233  ;;  %v1255_v28 = vmul.f32 %v2317_v15, %v3073_v57 }
 0x64c   : > { %2330 = vrcp.f32 %v1234_v33  ;;  %2092 = vmatmul.mubr.f32.gmra.mxu1 %v1262_v32 }
 0x64d   : > { %v2319_v29 = vpop.eup %2318  ;;  %2082 = vmatprep.mubr.f32.mxu0 %v1255_v28 }
 0x64e   : > { %v2321_v35 = vpop.eup %2320  ;;  %v1263_v36 = vmul.f32 %v2319_v29, %v3077_v59 }
 0x64f   : > { %v1256_v37 = vmul.f32 %v2321_v35, %v3079_v60 }
 0x650   : > { %2094 = vmatprep.mubr.f32.mxu1 %v1263_v36 }
 0x651   : > { %v2323_v38 = vpop.eup %2322  ;;  %2083 = vmatmul.mubr.f32.gmra.mxu0 %v1256_v37 }
 0x652   : > { %v2325_v40 = vpop.eup %2324  ;;  %v1264_v39 = vmul.f32 %v2323_v38, %v3083_v12 }
 0x653   : > { %v1257_v41 = vmul.f32 %v2325_v40, %v3085_v61 }
 0x654   : > { %2095 = vmatmul.mubr.f32.gmra.mxu1 %v1264_v39 }
 0x655   : > { %v2327_v42 = vpop.eup %2326  ;;  %2085 = vmatprep.mubr.f32.mxu0 %v1257_v41 }
 0x656   : > { %v2329_v43 = vpop.eup %2328  ;;  %v1265_v44 = vmul.f32 %v2327_v42, %v3089_v0 }
 0x657   : > { %v1258_v45 = vmul.f32 %v2329_v43, %v3091_v1 }
 0x658   : > { %2097 = vmatprep.mubr.f32.mxu1 %v1265_v44 }
 0x659   : > { %v2331_v46 = vpop.eup %2330  ;;  %2086 = vmatmul.mubr.f32.gmra.mxu0 %v1258_v45 }
 0x65a   : > { %v1266_v47 = vmul.f32 %v2331_v46, %v3095_v2 }
 0x65c   : > { %2098 = vmatmul.mubr.f32.gmra.mxu1 %v1266_v47 }
 0x701   : > { %v2078_v52 = vpop.f32.mrf.mxu0 }
 0x702   : > { %v3116_v53 = vadd.f32 %v2078_v52, %v1705_v51 }
 0x703   : > { %v1356_v54 = vpop.f32.mrf.mxu0 }
 0x704   : > { %v1436_v55 = vmax.f32 %v3116_v53, 0.0  ;;  %v3119_v56 = vadd.f32 %v1705_v51, %v1356_v54  ;;  %v2090_v48 = vpop.f32.mrf.mxu1 }
 0x705   : > { %v3121_v57 = vadd.f32 %v2090_v48, %v1705_v51 }
 0x706   : > { %v1435_v58 = vmax.f32 %v3119_v56, 0.0  ;;  %v1396_v59 = vpop.f32.mrf.mxu1 }
 0x707   : > { %v1444_v60 = vmax.f32 %v3121_v57, 0.0  ;;  %v3125_v12 = vadd.f32 %v1705_v51, %v1396_v59 }
 0x709   : > { %v1443_v61 = vmax.f32 %v3125_v12, 0.0  ;;  %v2081_v0 = vpop.f32.mrf.mxu0 }
 0x70a   : > { %v3128_v1 = vadd.f32 %v2081_v0, %v1705_v51 }
 0x70b   : > { %v1366_v2 = vpop.f32.mrf.mxu0 }
 0x70c   : > { %v1438_v3 = vmax.f32 %v3128_v1, 0.0  ;;  %v3131_v4 = vadd.f32 %v1705_v51, %v1366_v2  ;;  %v2093_v5 = vpop.f32.mrf.mxu1 }
 0x70d   : > { %v3133_v6 = vadd.f32 %v2093_v5, %v1705_v51 }
 0x70e   : > { %v1437_v7 = vmax.f32 %v3131_v4, 0.0  ;;  %v1406_v8 = vpop.f32.mrf.mxu1 }
 0x70f   : > { %v1446_v9 = vmax.f32 %v3133_v6, 0.0  ;;  %v1407_v10 = vadd.f32 %v1705_v51, %v1406_v8 }
 0x711   : > { %v1445_v11 = vmax.f32 %v1407_v10, 0.0  ;;  %v2084_v13 = vpop.f32.mrf.mxu0 }
 0x712   : > { %v3137_v16 = vadd.f32 %v2084_v13, %v1705_v51 }
 0x713   : > { %v1376_v17 = vpop.f32.mrf.mxu0 }
 0x714   : > { %v1440_v18 = vmax.f32 %v3137_v16, 0.0  ;;  %v3140_v19 = vadd.f32 %v1705_v51, %v1376_v17  ;;  %v2096_v34 = vpop.f32.mrf.mxu1 }
 0x715   : > { %v1422_v20 = vadd.f32 %v2096_v34, %v1705_v51 }
 0x716   : > { %v1439_v21 = vmax.f32 %v3140_v19, 0.0  ;;  %v1416_v22 = vpop.f32.mrf.mxu1 }
 0x717   : > { %v1448_v50 = vmax.f32 %v1422_v20, 0.0  ;;  %v1417_v49 = vadd.f32 %v1705_v51, %v1416_v22 }
 0x719   : > { %v1447_v23 = vmax.f32 %v1417_v49, 0.0  ;;  %v2087_v24 = vpop.f32.mrf.mxu0 }
 0x71a   : > { %v1392_v25 = vadd.f32 %v2087_v24, %v1705_v51 }
 0x71b   : > { %v1386_v62 = vpop.f32.mrf.mxu0 }
 0x71c   : > { %v1442_v63 = vmax.f32 %v1392_v25, 0.0  ;;  %v1387_v26 = vadd.f32 %v1705_v51, %v1386_v62  ;;  %v2099_v27 = vpop.f32.mrf.mxu1 }
 0x71d   : > { %v1432_v30 = vadd.f32 %v2099_v27, %v1705_v51  ;;  %1453 = sbr.rel (%p1706_p5) target bundleno = 1834 (0x72a), region = 76 }
 0x71e   : > { %v1441_v14 = vmax.f32 %v1387_v26, 0.0  ;;  %v1426_v31 = vpop.f32.mrf.mxu1 }
 0x71f   : > { %v1450_v15 = vmax.f32 %v1432_v30, 0.0  ;;  %v1427_v32 = vadd.f32 %v1705_v51, %v1426_v31 }
 0x721   : > { %v1449_v33 = vmax.f32 %v1427_v32, 0.0 }
 0x722   : > { %1455 = vst [vmem:[#allocation2 + $0x30] sm:$0xff] %v1435_v58  ;;  %1456 = vst [vmem:[#allocation2] sm:$0xff] %v1436_v55 }
 0x723   : > { %1457 = vst [vmem:[#allocation2 + $0x58] sm:$0xff] %v1437_v7  ;;  %1458 = vst [vmem:[#allocation2 + $0x18] sm:$0xff] %v1438_v3 }
 0x724   : > { %1459 = vst [vmem:[#allocation2 + $0x50] sm:$0xff] %v1439_v21  ;;  %1460 = vst [vmem:[#allocation2 + $0x68] sm:$0xff] %v1440_v18 }
 0x725   : > { %1461 = vst [vmem:[#allocation2 + $0x8] sm:$0xff] %v1441_v14  ;;  %1462 = vst [vmem:[#allocation2 + $0x48] sm:$0xff] %v1442_v63 }
 0x726   : > { %1463 = vst [vmem:[#allocation2 + $0x40] sm:$0xff] %v1443_v61  ;;  %1464 = vst [vmem:[#allocation2 + $0x20] sm:$0xff] %v1444_v60 }
 0x727   : > { %1465 = vst [vmem:[#allocation2 + $0x10] sm:$0xff] %v1445_v11  ;;  %1466 = vst [vmem:[#allocation2 + $0x38] sm:$0xff] %v1446_v9 }
 0x728   : > { %1467 = vst [vmem:[#allocation2 + $0x60] sm:$0xff] %v1447_v23  ;;  %1468 = vst [vmem:[#allocation2 + $0x70] sm:$0xff] %v1448_v50 }
 0x729   : > { %1469 = vst [vmem:[#allocation2 + $0x78] sm:$0xff] %v1449_v33  ;;  %1470 = vst [vmem:[#allocation2 + $0x28] sm:$0xff] %v1450_v15 }
 0x72a PF: > { %p1707_p4 = scmp.ne.s32.totalorder %s2550_s24, 1 }
 0x72b   : > { %s3236_s18 = sld [smem:[#allocation22_spill]] (!%p1707_p4) }
 0x72c   : > { %1473 = sbr.rel (%p1707_p4) target bundleno = 2070 (0x816), region = 80 }
 0x731   : > { %v2571_v28 = vmov 0.0   ;;  %vm2572_vm2 = vmmov 0   ;;  %v1477_v29 = vld [vmem:[%s3236_s18] sm:$0xff] }
 0x732   : > { %2100 = vmatprep.subr.mxu0 %v2571_v28  ;;  %2132 = vmatprep.mubr.msk.f32.mxu0 %vm2572_vm2, %v2571_v28  ;;  %v1478_v35 = vld [vmem:[#allocation14] sm:$0xff] }
 0x733   : > { %2101 = vmatpush3.msra.mxu0 %v1450_v15 }
 0x734   : > { %2102 = vmatprep.subr.mxu0 %v2571_v28 }
 0x735   : > { %2103 = vmatpush3.msra.mxu0 %v1449_v33 }
 0x736   : > { %2104 = vmatprep.subr.mxu0 %v2571_v28 }
 0x737   : > { %2105 = vmatpush3.msra.mxu0 %v1448_v50 }
 0x738   : > { %2106 = vmatprep.subr.mxu0 %v2571_v28 }
 0x739   : > { %2107 = vmatpush3.msra.mxu0 %v1447_v23 }
 0x73a   : > { %2108 = vmatprep.subr.mxu0 %v2571_v28 }
 0x73b   : > { %2109 = vmatpush3.msra.mxu0 %v1446_v9 }
 0x73c   : > { %2110 = vmatprep.subr.mxu0 %v2571_v28 }
 0x73d   : > { %2111 = vmatpush3.msra.mxu0 %v1445_v11 }
 0x73e   : > { %2112 = vmatprep.subr.mxu0 %v2571_v28 }
 0x73f   : > { %2113 = vmatpush3.msra.mxu0 %v1444_v60 }
 0x740   : > { %2114 = vmatprep.subr.mxu0 %v2571_v28 }
 0x741   : > { %2115 = vmatpush3.msra.mxu0 %v1443_v61 }
 0x742   : > { %2116 = vmatprep.subr.mxu0 %v2571_v28 }
 0x743   : > { %2117 = vmatpush3.msra.mxu0 %v1442_v63 }
 0x744   : > { %2118 = vmatprep.subr.mxu0 %v2571_v28 }
 0x745   : > { %2119 = vmatpush3.msra.mxu0 %v1441_v14 }
 0x746   : > { %2120 = vmatprep.subr.mxu0 %v2571_v28 }
 0x747   : > { %2121 = vmatpush3.msra.mxu0 %v1440_v18 }
 0x748   : > { %2122 = vmatprep.subr.mxu0 %v2571_v28 }
 0x749   : > { %2123 = vmatpush3.msra.mxu0 %v1439_v21 }
 0x74a   : > { %2124 = vmatprep.subr.mxu0 %v2571_v28 }
 0x74b   : > { %2125 = vmatpush3.msra.mxu0 %v1438_v3 }
 0x74c   : > { %2126 = vmatprep.subr.mxu0 %v2571_v28 }
 0x74d   : > { %2127 = vmatpush3.msra.mxu0 %v1437_v7 }
 0x74e   : > { %2128 = vmatprep.subr.mxu0 %v2571_v28 }
 0x74f   : > { %2129 = vmatpush3.msra.mxu0 %v1436_v55 }
 0x750   : > { %2130 = vmatprep.subr.mxu0 %v2571_v28 }
 0x751   : > { %2131 = vmatpush3.msra.mxu0 %v1435_v58 }
 0x752   : > { %2133 = vmatmul.mubr.f32.vlgmr.msra.gmra.mxu0 %v1477_v29 }
 0x812   : > { %v1545_v36 = vpop.f32.mrf.mxu0 }
 0x813   : > { %v1549_v37 = vadd.f32 %v1545_v36, %v1478_v35 }
 0x814   : > { %v2134_v38 = vpop.f32.mrf.mxu0 }
 0x815   : > { %1550 = vst [vmem:[#allocation14] sm:$0xff] %v1549_v37 }
 0x816 PF: > { %p2207_p11 = scmp.eq.s32.totalorder %s2638_s27, 1  ;;  %s2573_s8 = smov [#allocation14]  }
 0x817   : > { %s1558_s9 = sshll.u32 %s2573_s8, 4  ;;  %s1559_s9 = int_to_ptr.vmem [resolvable:$true] %s1558_s9 }
 0x818   : > { %s2468_s12 = scalar_lea.vmem %s1559_s9, 128  ;;  %p2475_p3 = scmp.lt.s32.totalorder %s1559_s9, %s1559_s9 }
 0x819   : > { %p2469_p7 = scmp.ne.s32.totalorder %s1559_s9, %s2468_s12  ;;  %p2476_p1 = scmp.lt.s32.totalorder %s2468_s12, %s2468_s12 }
 0x81b   : > { %p2470_p13 = pnand %p2469_p7, %p2207_p11  ;;  %p2477_p10 = por %p2476_p1, %p2475_p3 }
 0x81d   : > { %p2471_p9 = pneg %p2470_p13 }
 0x81f   : > { %p2478_p0 = pnand %p2477_p10, %p2471_p9 }
 0x821   : > { %2481 = shalt.err (!%p2478_p0)
}
 0x822   : > { %s3237_s28 = sld [smem:[#allocation23_spill]] }
 0x828   : > { %2182 = dma.vmem_to_hbm [thread:$0]  (%p2207_p11), %s1559_s9, 128, %s3237_s28, [#allocation7]  }
 0x829   : > { %2533 = dma.done.wait (%p2207_p11), [#allocation7], 128  }
 0x82a   : > { %2535 = vsyncadd (%p2207_p11), [#allocation7], 4294967168 }
 0x82b PF: > { %s24_s26 = sadd.s32 1, %s2558_s26   ;;  %s3238_s21 = smov %s2542_s22 }
 0x82c   : > { %p21_p8 = scmp.ge.s32.totalorder %s24_s26, 4   ;;  %s3239_s22 = smov %s2546_s23 }
 0x82d   : > { %s3240_s23 = smov %s2704_s13  ;;  %s3241_s24 = smov %s2554_s25 }
 0x82e   : > { %s3242_s25 = smov %s3244_s11  ;;  %23 = sbr.rel (!%p21_p8) target bundleno = 13 (0xd), region = 134 }
 0x833   :  { %1571 = vsyncpa [#allocation6], 1 }
 0x834   :  { %1573 = vsyncpa [#allocation6 + $0x1], 1 }
 0x835   :  { %1574 = vsyncpa [#allocation9], 1 }
 0x836   :  { %1576 = vsyncpa [#allocation9 + $0x1], 1 }
 0x837   :  { %1577 = vsyncpa [#allocation12], 1 }
 0x838   :  { %1579 = vsyncpa [#allocation12 + $0x1], 1 }
 0x839   :  { %1580 = vsyncpa [#allocation7], 1 }
 0x83a   :  { %1582 = vsyncpa [#allocation7 + $0x1], 1 }

</bundles_post_ra>
